<compile_context>
chip_gen: v5e
topology: v5e:2x2
jax: 0.10.0
libtpu: 0.0.40
codegen_flags: <defaults>
</compile_context>

<pallas_src>
import functools

import jax
import jax.numpy as jnp
from jax.experimental import pallas as pl
from jax.experimental.pallas import tpu as pltpu


# ----------------------------------------------------------------------------
# Pallas kernel: one tile of `block_rows` flattened batch rows.
# ----------------------------------------------------------------------------
def _segdeact_kernel(x_ref, grid_ref, base_wt_ref, w_eff_ref, a_eff_ref,
                     c_bias_ref, o_ref, *, spline_order):
    x = x_ref[...].astype(jnp.float32)                  # (TB, F_in)
    g = grid_ref[...].astype(jnp.float32)               # (n_knots, F_in)
    n_knots = g.shape[0]
    knots = [g[j:j + 1, :] for j in range(n_knots)]     # each (1, F_in)

    # order-0 indicator bases
    bases = [
        jnp.logical_and(x >= knots[j], x < knots[j + 1]).astype(jnp.float32)
        for j in range(n_knots - 1)
    ]
    # Cox–de Boor recursion, unrolled (spline_order is a small static int).
    for k in range(1, spline_order + 1):
        bases = [
            (x - knots[j]) / (knots[j + k] - knots[j]) * bases[j]
            + (knots[j + k + 1] - x) / (knots[j + k + 1] - knots[j + 1]) * bases[j + 1]
            for j in range(len(bases) - 1)
        ]
    # len(bases) == grid_size + spline_order == w_eff_ref.shape[0]

    # base (residual) path: silu(x) @ base_W^T  (MXU)
    acc = jnp.dot(jax.nn.silu(x), base_wt_ref[...],
                  preferred_element_type=jnp.float32)    # (TB, F_out)
    # deactivated-segment linear replacement, folded into one matmul + bias
    acc += jnp.dot(x, a_eff_ref[...], preferred_element_type=jnp.float32)
    acc += c_bias_ref[...]                               # (1, F_out) broadcast
    # active spline contributions (deactivated (o,i) pairs pre-zeroed in w_eff)
    for c, b_c in enumerate(bases):
        acc += jnp.dot(b_c, w_eff_ref[c], preferred_element_type=jnp.float32)

    o_ref[...] = acc.astype(o_ref.dtype)


# ----------------------------------------------------------------------------
# Plain-JAX B-spline helper (used for the tiny endpoint evaluation and the
# reference check; matches KANLinear.b_splines exactly).
# ----------------------------------------------------------------------------
def _b_splines(x, knot_grid, spline_order):
    # x: (N, F_in), knot_grid: (F_in, n_knots) -> (N, F_in, grid_size+spline_order)
    x = x[..., None]
    g = knot_grid[None, :, :]
    bases = ((x >= g[..., :-1]) & (x < g[..., 1:])).astype(x.dtype)
    for k in range(1, spline_order + 1):
        bases = ((x - g[..., :-(k + 1)]) / (g[..., k:-1] - g[..., :-(k + 1)]) * bases[..., :-1]
                 + (g[..., k + 1:] - x) / (g[..., k + 1:] - g[..., 1:-k]) * bases[..., 1:])
    return bases


def make_deactivation_mask(key, out_features, in_features, p_deactivate):
    # torch.rand(out, in) < p  -- tiny, drawn once per call in plain JAX.
    return jax.random.uniform(key, (out_features, in_features)) < p_deactivate


# ----------------------------------------------------------------------------
# Wrapper: preprocess weights once, then run the tiled Pallas kernel.
# ----------------------------------------------------------------------------
def segment_deactivation_forward(x, params, deactivate_mask=None, *,
                                 training=True, block_rows=256):
    base_w = params["base_weight"].astype(jnp.float32)        # (F_out, F_in)
    spline_w = params["spline_weight"].astype(jnp.float32)    # (F_out, F_in, C)
    scaler = params["spline_scaler"].astype(jnp.float32)      # (F_out, F_in)
    knot_grid = params["grid"].astype(jnp.float32)            # (F_in, n_knots)
    spline_order = int(params["spline_order"])

    f_out, f_in = base_w.shape
    n_coef = spline_w.shape[-1]

    orig_shape = x.shape
    x2 = x.reshape(-1, f_in).astype(jnp.float32)               # free reshape, no transpose
    n_rows = x2.shape[0]

    scaled_w = spline_w * scaler[..., None]                    # (F_out, F_in, C)

    # Eval mode or p == 0  ->  plain kan_layer(x): identical math with zero mask.
    if (not training) or (deactivate_mask is None):
        maskf = jnp.zeros((f_out, f_in), jnp.float32)
    else:
        maskf = deactivate_mask.astype(jnp.float32)

    # --- per-call preprocessing (tiny, O(F_out*F_in*C), plain JAX) -----------
    # spline values at the grid endpoints -> per-(o,i) linear replacement a*x+b
    grid_min = knot_grid[:, spline_order].min()
    grid_max = knot_grid[:, -spline_order - 1].max()
    ends = jnp.stack([jnp.full((f_in,), grid_min), jnp.full((f_in,), grid_max)])
    y_ends = jnp.einsum("nic,oic->noi", _b_splines(ends, knot_grid, spline_order),
                        scaled_w)                              # (2, F_out, F_in)
    y_start, y_end = y_ends[0], y_ends[1]
    delta = grid_max - grid_min
    degenerate = jnp.abs(delta) < 1e-8
    safe_delta = jnp.where(degenerate, 1.0, delta)
    a_lin = jnp.where(degenerate, 0.0, (y_end - y_start) / safe_delta)
    b_lin = jnp.where(degenerate, y_start, y_start - a_lin * grid_min)

    # Fold the deactivation mask into the weights (exact: mask is 0/1).
    w_eff = jnp.transpose(scaled_w * (1.0 - maskf)[..., None], (2, 1, 0))  # (C, F_in, F_out)
    a_eff = (maskf * a_lin).T                                              # (F_in, F_out)
    c_bias = jnp.sum(maskf * b_lin, axis=1)[None, :]                       # (1, F_out)
    base_wt = base_w.T                                                     # (F_in, F_out)
    grid_t = knot_grid.T                                                   # (n_knots, F_in)

    # --- row tiling: multiple of 8 sublanes; BlockSpec double-buffers --------
    # TODO(synk): for very large layers also tile over F_out so the resident
    # weight block stays within v7x's 64 MiB VMEM.
    tb = min(block_rows, max(8, ((n_rows + 7) // 8) * 8))
    tb = ((tb + 7) // 8) * 8
    rows_pad = pl.cdiv(n_rows, tb) * tb
    if rows_pad != n_rows:
        x2 = jnp.pad(x2, ((0, rows_pad - n_rows), (0, 0)))

    kern = functools.partial(_segdeact_kernel, spline_order=spline_order)
    out = pl.pallas_call(
        kern,
        out_shape=jax.ShapeDtypeStruct((rows_pad, f_out), jnp.float32),
        grid=(rows_pad // tb,),
        in_specs=[
            pl.BlockSpec((tb, f_in), lambda i: (i, 0)),                 # x tile
            pl.BlockSpec(grid_t.shape, lambda i: (0, 0)),               # knot grid
            pl.BlockSpec((f_in, f_out), lambda i: (0, 0)),              # base_W^T
            pl.BlockSpec((n_coef, f_in, f_out), lambda i: (0, 0, 0)),   # masked spline W
            pl.BlockSpec((f_in, f_out), lambda i: (0, 0)),              # mask*a ^T
            pl.BlockSpec((1, f_out), lambda i: (0, 0)),                 # sum_i mask*b
        ],
        out_specs=pl.BlockSpec((tb, f_out), lambda i: (i, 0)),
        compiler_params=pltpu.CompilerParams(
            dimension_semantics=("parallel",)),   # batch tiles are independent (v7x 2 TCs)
    )(x2, grid_t, base_wt, w_eff, a_eff, c_bias)

    out = out[:n_rows]
    return out.reshape(*orig_shape[:-1], f_out).astype(x.dtype)


# ----------------------------------------------------------------------------
# Pure-JAX reference mirroring the PyTorch forward exactly (for verification).
# ----------------------------------------------------------------------------
def segment_deactivation_reference(x, params, deactivate_mask=None, training=True):
    base_w = params["base_weight"]
    spline_w = params["spline_weight"]
    scaler = params["spline_scaler"]
    knot_grid = params["grid"]
    so = int(params["spline_order"])
    f_out, f_in = base_w.shape

    x2 = x.reshape(-1, f_in)
    scaled_w = spline_w * scaler[..., None]
    base_out = jax.nn.silu(x2) @ base_w.T
    bases = _b_splines(x2, knot_grid, so)
    spline_contrib = jnp.einsum("bic,oic->boi", bases, scaled_w)

    if training and deactivate_mask is not None:
        grid_min = knot_grid[:, so].min()
        grid_max = knot_grid[:, -so - 1].max()
        ends = jnp.stack([jnp.full((f_in,), grid_min), jnp.full((f_in,), grid_max)])
        y_ends = jnp.einsum("nic,oic->noi", _b_splines(ends, knot_grid, so), scaled_w)
        y_start, y_end = y_ends[0], y_ends[1]
        delta = grid_max - grid_min
        degenerate = jnp.abs(delta) < 1e-8
        a = jnp.where(degenerate, 0.0,
                      (y_end - y_start) / jnp.where(degenerate, 1.0, delta))
        b = jnp.where(degenerate, y_start, y_start - a * grid_min)
        lin = a[None] * x2[:, None, :] + b[None]
        spline_contrib = jnp.where(deactivate_mask[None], lin, spline_contrib)

    out = base_out + spline_contrib.sum(-1)
    return out.reshape(*x.shape[:-1], f_out)


if __name__ == "__main__":
    key = jax.random.PRNGKey(0)
    k1, k2, k3, k4, k5 = jax.random.split(key, 5)

    batch, seq, f_in, f_out = 2, 8, 32, 16
    grid_size, spline_order = 5, 3
    p_deactivate = 0.4

    # KANLinear-style uniform knot grid over [-1, 1], per input feature.
    h = 2.0 / grid_size
    knots = jnp.arange(-spline_order, grid_size + spline_order + 1,
                       dtype=jnp.float32) * h - 1.0                   # (n_knots,)
    knot_grid = jnp.tile(knots[None, :], (f_in, 1))                   # (F_in, n_knots)

    params = {
        "base_weight": jax.random.normal(k1, (f_out, f_in), jnp.float32) / jnp.sqrt(f_in),
        "spline_weight": jax.random.normal(k2, (f_out, f_in, grid_size + spline_order),
                                           jnp.float32) * 0.1,
        "spline_scaler": 1.0 + 0.1 * jax.random.normal(k3, (f_out, f_in), jnp.float32),
        "grid": knot_grid,
        "spline_order": spline_order,
    }

    x = jax.random.uniform(k4, (batch, seq, f_in), jnp.float32, minval=-1.0, maxval=1.0)
    mask = make_deactivation_mask(k5, f_out, f_in, p_deactivate)

    # Training path with segment deactivation.
    y = segment_deactivation_forward(x, params, deactivate_mask=mask, training=True)
    y = jax.block_until_ready(y)
    y_ref = segment_deactivation_reference(x, params, deactivate_mask=mask, training=True)
    assert y.shape == (batch, seq, f_out) and y.dtype == x.dtype
    assert bool(jnp.all(jnp.isfinite(y)))
    assert bool(jnp.allclose(y, y_ref, atol=3e-2, rtol=3e-2))

    # Eval mode (== plain KANLinear forward, same as p_deactivate == 0).
    y_eval = segment_deactivation_forward(x, params, deactivate_mask=mask, training=False)
    y_eval = jax.block_until_ready(y_eval)
    y_eval_ref = segment_deactivation_reference(x, params, deactivate_mask=None,
                                                training=False)
    assert bool(jnp.allclose(y_eval, y_eval_ref, atol=3e-2, rtol=3e-2))

    print("KERNEL_OK")
</pallas_src>

<mosaic_0001>
module attributes {stable_mosaic.version = 11 : i64} {
  func.func @_segdeact_kernel(%arg0: i32, %arg1: memref<16x32xf32, #tpu.memory_space<vmem>>, %arg2: memref<12x32xf32, #tpu.memory_space<vmem>>, %arg3: memref<32x16xf32, #tpu.memory_space<vmem>>, %arg4: memref<8x32x16xf32, #tpu.memory_space<vmem>>, %arg5: memref<32x16xf32, #tpu.memory_space<vmem>>, %arg6: memref<1x16xf32, #tpu.memory_space<vmem>>, %arg7: memref<16x16xf32, #tpu.memory_space<vmem>>) attributes {dimension_semantics = [#tpu.dimension_semantics<parallel>], iteration_bounds = array<i64: 1>, scalar_prefetch = 0 : i64, scratch_operands = 0 : i64, tpu.core_type = #tpu.core_type<tc>, window_params = [{transform_indices = @transform_0, window_bounds = array<i64: 16, 32>}, {pipeline_mode = #tpu.pipeline_mode<synchronous>, transform_indices = @transform_1, window_bounds = array<i64: 12, 32>}, {pipeline_mode = #tpu.pipeline_mode<synchronous>, transform_indices = @transform_2, window_bounds = array<i64: 32, 16>}, {pipeline_mode = #tpu.pipeline_mode<synchronous>, transform_indices = @transform_3, window_bounds = array<i64: 8, 32, 16>}, {pipeline_mode = #tpu.pipeline_mode<synchronous>, transform_indices = @transform_4, window_bounds = array<i64: 32, 16>}, {pipeline_mode = #tpu.pipeline_mode<synchronous>, transform_indices = @transform_5, window_bounds = array<i64: 1, 16>}, {transform_indices = @transform_6, window_bounds = array<i64: 16, 16>}]} {
    %c0 = arith.constant 0 : index
    %c0_0 = arith.constant 0 : index
    %0 = vector.load %arg1[%c0, %c0_0] : memref<16x32xf32, #tpu.memory_space<vmem>>, vector<16x32xf32>
    %c0_1 = arith.constant 0 : index
    %c0_2 = arith.constant 0 : index
    %1 = vector.load %arg2[%c0_1, %c0_2] : memref<12x32xf32, #tpu.memory_space<vmem>>, vector<12x32xf32>
    %2 = vector.extract_strided_slice %1 {offsets = [0, 0], sizes = [1, 32], strides = [1, 1]} : vector<12x32xf32> to vector<1x32xf32>
    %3 = vector.extract_strided_slice %1 {offsets = [1, 0], sizes = [1, 32], strides = [1, 1]} : vector<12x32xf32> to vector<1x32xf32>
    %4 = vector.extract_strided_slice %1 {offsets = [2, 0], sizes = [1, 32], strides = [1, 1]} : vector<12x32xf32> to vector<1x32xf32>
    %5 = vector.extract_strided_slice %1 {offsets = [3, 0], sizes = [1, 32], strides = [1, 1]} : vector<12x32xf32> to vector<1x32xf32>
    %6 = vector.extract_strided_slice %1 {offsets = [4, 0], sizes = [1, 32], strides = [1, 1]} : vector<12x32xf32> to vector<1x32xf32>
    %7 = vector.extract_strided_slice %1 {offsets = [5, 0], sizes = [1, 32], strides = [1, 1]} : vector<12x32xf32> to vector<1x32xf32>
    %8 = vector.extract_strided_slice %1 {offsets = [6, 0], sizes = [1, 32], strides = [1, 1]} : vector<12x32xf32> to vector<1x32xf32>
    %9 = vector.extract_strided_slice %1 {offsets = [7, 0], sizes = [1, 32], strides = [1, 1]} : vector<12x32xf32> to vector<1x32xf32>
    %10 = vector.extract_strided_slice %1 {offsets = [8, 0], sizes = [1, 32], strides = [1, 1]} : vector<12x32xf32> to vector<1x32xf32>
    %11 = vector.extract_strided_slice %1 {offsets = [9, 0], sizes = [1, 32], strides = [1, 1]} : vector<12x32xf32> to vector<1x32xf32>
    %12 = vector.extract_strided_slice %1 {offsets = [10, 0], sizes = [1, 32], strides = [1, 1]} : vector<12x32xf32> to vector<1x32xf32>
    %13 = vector.extract_strided_slice %1 {offsets = [11, 0], sizes = [1, 32], strides = [1, 1]} : vector<12x32xf32> to vector<1x32xf32>
    %14 = vector.broadcast %2 : vector<1x32xf32> to vector<16x32xf32>
    %15 = arith.cmpf oge, %0, %14 : vector<16x32xf32>
    %16 = vector.broadcast %3 : vector<1x32xf32> to vector<16x32xf32>
    %17 = arith.cmpf olt, %0, %16 : vector<16x32xf32>
    %18 = arith.andi %15, %17 : vector<16x32xi1>
    %19 = arith.extui %18 : vector<16x32xi1> to vector<16x32xi32>
    %20 = arith.sitofp %19 : vector<16x32xi32> to vector<16x32xf32>
    %21 = vector.broadcast %3 : vector<1x32xf32> to vector<16x32xf32>
    %22 = arith.cmpf oge, %0, %21 : vector<16x32xf32>
    %23 = vector.broadcast %4 : vector<1x32xf32> to vector<16x32xf32>
    %24 = arith.cmpf olt, %0, %23 : vector<16x32xf32>
    %25 = arith.andi %22, %24 : vector<16x32xi1>
    %26 = arith.extui %25 : vector<16x32xi1> to vector<16x32xi32>
    %27 = arith.sitofp %26 : vector<16x32xi32> to vector<16x32xf32>
    %28 = vector.broadcast %4 : vector<1x32xf32> to vector<16x32xf32>
    %29 = arith.cmpf oge, %0, %28 : vector<16x32xf32>
    %30 = vector.broadcast %5 : vector<1x32xf32> to vector<16x32xf32>
    %31 = arith.cmpf olt, %0, %30 : vector<16x32xf32>
    %32 = arith.andi %29, %31 : vector<16x32xi1>
    %33 = arith.extui %32 : vector<16x32xi1> to vector<16x32xi32>
    %34 = arith.sitofp %33 : vector<16x32xi32> to vector<16x32xf32>
    %35 = vector.broadcast %5 : vector<1x32xf32> to vector<16x32xf32>
    %36 = arith.cmpf oge, %0, %35 : vector<16x32xf32>
    %37 = vector.broadcast %6 : vector<1x32xf32> to vector<16x32xf32>
    %38 = arith.cmpf olt, %0, %37 : vector<16x32xf32>
    %39 = arith.andi %36, %38 : vector<16x32xi1>
    %40 = arith.extui %39 : vector<16x32xi1> to vector<16x32xi32>
    %41 = arith.sitofp %40 : vector<16x32xi32> to vector<16x32xf32>
    %42 = vector.broadcast %6 : vector<1x32xf32> to vector<16x32xf32>
    %43 = arith.cmpf oge, %0, %42 : vector<16x32xf32>
    %44 = vector.broadcast %7 : vector<1x32xf32> to vector<16x32xf32>
    %45 = arith.cmpf olt, %0, %44 : vector<16x32xf32>
    %46 = arith.andi %43, %45 : vector<16x32xi1>
    %47 = arith.extui %46 : vector<16x32xi1> to vector<16x32xi32>
    %48 = arith.sitofp %47 : vector<16x32xi32> to vector<16x32xf32>
    %49 = vector.broadcast %7 : vector<1x32xf32> to vector<16x32xf32>
    %50 = arith.cmpf oge, %0, %49 : vector<16x32xf32>
    %51 = vector.broadcast %8 : vector<1x32xf32> to vector<16x32xf32>
    %52 = arith.cmpf olt, %0, %51 : vector<16x32xf32>
    %53 = arith.andi %50, %52 : vector<16x32xi1>
    %54 = arith.extui %53 : vector<16x32xi1> to vector<16x32xi32>
    %55 = arith.sitofp %54 : vector<16x32xi32> to vector<16x32xf32>
    %56 = vector.broadcast %8 : vector<1x32xf32> to vector<16x32xf32>
    %57 = arith.cmpf oge, %0, %56 : vector<16x32xf32>
    %58 = vector.broadcast %9 : vector<1x32xf32> to vector<16x32xf32>
    %59 = arith.cmpf olt, %0, %58 : vector<16x32xf32>
    %60 = arith.andi %57, %59 : vector<16x32xi1>
    %61 = arith.extui %60 : vector<16x32xi1> to vector<16x32xi32>
    %62 = arith.sitofp %61 : vector<16x32xi32> to vector<16x32xf32>
    %63 = vector.broadcast %9 : vector<1x32xf32> to vector<16x32xf32>
    %64 = arith.cmpf oge, %0, %63 : vector<16x32xf32>
    %65 = vector.broadcast %10 : vector<1x32xf32> to vector<16x32xf32>
    %66 = arith.cmpf olt, %0, %65 : vector<16x32xf32>
    %67 = arith.andi %64, %66 : vector<16x32xi1>
    %68 = arith.extui %67 : vector<16x32xi1> to vector<16x32xi32>
    %69 = arith.sitofp %68 : vector<16x32xi32> to vector<16x32xf32>
    %70 = vector.broadcast %10 : vector<1x32xf32> to vector<16x32xf32>
    %71 = arith.cmpf oge, %0, %70 : vector<16x32xf32>
    %72 = vector.broadcast %11 : vector<1x32xf32> to vector<16x32xf32>
    %73 = arith.cmpf olt, %0, %72 : vector<16x32xf32>
    %74 = arith.andi %71, %73 : vector<16x32xi1>
    %75 = arith.extui %74 : vector<16x32xi1> to vector<16x32xi32>
    %76 = arith.sitofp %75 : vector<16x32xi32> to vector<16x32xf32>
    %77 = vector.broadcast %11 : vector<1x32xf32> to vector<16x32xf32>
    %78 = arith.cmpf oge, %0, %77 : vector<16x32xf32>
    %79 = vector.broadcast %12 : vector<1x32xf32> to vector<16x32xf32>
    %80 = arith.cmpf olt, %0, %79 : vector<16x32xf32>
    %81 = arith.andi %78, %80 : vector<16x32xi1>
    %82 = arith.extui %81 : vector<16x32xi1> to vector<16x32xi32>
    %83 = arith.sitofp %82 : vector<16x32xi32> to vector<16x32xf32>
    %84 = vector.broadcast %12 : vector<1x32xf32> to vector<16x32xf32>
    %85 = arith.cmpf oge, %0, %84 : vector<16x32xf32>
    %86 = vector.broadcast %13 : vector<1x32xf32> to vector<16x32xf32>
    %87 = arith.cmpf olt, %0, %86 : vector<16x32xf32>
    %88 = arith.andi %85, %87 : vector<16x32xi1>
    %89 = arith.extui %88 : vector<16x32xi1> to vector<16x32xi32>
    %90 = arith.sitofp %89 : vector<16x32xi32> to vector<16x32xf32>
    %91 = vector.broadcast %2 : vector<1x32xf32> to vector<16x32xf32>
    %92 = arith.subf %0, %91 : vector<16x32xf32>
    %93 = arith.subf %3, %2 : vector<1x32xf32>
    %94 = vector.broadcast %93 : vector<1x32xf32> to vector<16x32xf32>
    %95 = arith.divf %92, %94 : vector<16x32xf32>
    %96 = arith.mulf %95, %20 : vector<16x32xf32>
    %97 = vector.broadcast %4 : vector<1x32xf32> to vector<16x32xf32>
    %98 = arith.subf %97, %0 : vector<16x32xf32>
    %99 = arith.subf %4, %3 : vector<1x32xf32>
    %100 = vector.broadcast %99 : vector<1x32xf32> to vector<16x32xf32>
    %101 = arith.divf %98, %100 : vector<16x32xf32>
    %102 = arith.mulf %101, %27 : vector<16x32xf32>
    %103 = arith.addf %96, %102 : vector<16x32xf32>
    %104 = vector.broadcast %3 : vector<1x32xf32> to vector<16x32xf32>
    %105 = arith.subf %0, %104 : vector<16x32xf32>
    %106 = arith.subf %4, %3 : vector<1x32xf32>
    %107 = vector.broadcast %106 : vector<1x32xf32> to vector<16x32xf32>
    %108 = arith.divf %105, %107 : vector<16x32xf32>
    %109 = arith.mulf %108, %27 : vector<16x32xf32>
    %110 = vector.broadcast %5 : vector<1x32xf32> to vector<16x32xf32>
    %111 = arith.subf %110, %0 : vector<16x32xf32>
    %112 = arith.subf %5, %4 : vector<1x32xf32>
    %113 = vector.broadcast %112 : vector<1x32xf32> to vector<16x32xf32>
    %114 = arith.divf %111, %113 : vector<16x32xf32>
    %115 = arith.mulf %114, %34 : vector<16x32xf32>
    %116 = arith.addf %109, %115 : vector<16x32xf32>
    %117 = vector.broadcast %4 : vector<1x32xf32> to vector<16x32xf32>
    %118 = arith.subf %0, %117 : vector<16x32xf32>
    %119 = arith.subf %5, %4 : vector<1x32xf32>
    %120 = vector.broadcast %119 : vector<1x32xf32> to vector<16x32xf32>
    %121 = arith.divf %118, %120 : vector<16x32xf32>
    %122 = arith.mulf %121, %34 : vector<16x32xf32>
    %123 = vector.broadcast %6 : vector<1x32xf32> to vector<16x32xf32>
    %124 = arith.subf %123, %0 : vector<16x32xf32>
    %125 = arith.subf %6, %5 : vector<1x32xf32>
    %126 = vector.broadcast %125 : vector<1x32xf32> to vector<16x32xf32>
    %127 = arith.divf %124, %126 : vector<16x32xf32>
    %128 = arith.mulf %127, %41 : vector<16x32xf32>
    %129 = arith.addf %122, %128 : vector<16x32xf32>
    %130 = vector.broadcast %5 : vector<1x32xf32> to vector<16x32xf32>
    %131 = arith.subf %0, %130 : vector<16x32xf32>
    %132 = arith.subf %6, %5 : vector<1x32xf32>
    %133 = vector.broadcast %132 : vector<1x32xf32> to vector<16x32xf32>
    %134 = arith.divf %131, %133 : vector<16x32xf32>
    %135 = arith.mulf %134, %41 : vector<16x32xf32>
    %136 = vector.broadcast %7 : vector<1x32xf32> to vector<16x32xf32>
    %137 = arith.subf %136, %0 : vector<16x32xf32>
    %138 = arith.subf %7, %6 : vector<1x32xf32>
    %139 = vector.broadcast %138 : vector<1x32xf32> to vector<16x32xf32>
    %140 = arith.divf %137, %139 : vector<16x32xf32>
    %141 = arith.mulf %140, %48 : vector<16x32xf32>
    %142 = arith.addf %135, %141 : vector<16x32xf32>
    %143 = vector.broadcast %6 : vector<1x32xf32> to vector<16x32xf32>
    %144 = arith.subf %0, %143 : vector<16x32xf32>
    %145 = arith.subf %7, %6 : vector<1x32xf32>
    %146 = vector.broadcast %145 : vector<1x32xf32> to vector<16x32xf32>
    %147 = arith.divf %144, %146 : vector<16x32xf32>
    %148 = arith.mulf %147, %48 : vector<16x32xf32>
    %149 = vector.broadcast %8 : vector<1x32xf32> to vector<16x32xf32>
    %150 = arith.subf %149, %0 : vector<16x32xf32>
    %151 = arith.subf %8, %7 : vector<1x32xf32>
    %152 = vector.broadcast %151 : vector<1x32xf32> to vector<16x32xf32>
    %153 = arith.divf %150, %152 : vector<16x32xf32>
    %154 = arith.mulf %153, %55 : vector<16x32xf32>
    %155 = arith.addf %148, %154 : vector<16x32xf32>
    %156 = vector.broadcast %7 : vector<1x32xf32> to vector<16x32xf32>
    %157 = arith.subf %0, %156 : vector<16x32xf32>
    %158 = arith.subf %8, %7 : vector<1x32xf32>
    %159 = vector.broadcast %158 : vector<1x32xf32> to vector<16x32xf32>
    %160 = arith.divf %157, %159 : vector<16x32xf32>
    %161 = arith.mulf %160, %55 : vector<16x32xf32>
    %162 = vector.broadcast %9 : vector<1x32xf32> to vector<16x32xf32>
    %163 = arith.subf %162, %0 : vector<16x32xf32>
    %164 = arith.subf %9, %8 : vector<1x32xf32>
    %165 = vector.broadcast %164 : vector<1x32xf32> to vector<16x32xf32>
    %166 = arith.divf %163, %165 : vector<16x32xf32>
    %167 = arith.mulf %166, %62 : vector<16x32xf32>
    %168 = arith.addf %161, %167 : vector<16x32xf32>
    %169 = vector.broadcast %8 : vector<1x32xf32> to vector<16x32xf32>
    %170 = arith.subf %0, %169 : vector<16x32xf32>
    %171 = arith.subf %9, %8 : vector<1x32xf32>
    %172 = vector.broadcast %171 : vector<1x32xf32> to vector<16x32xf32>
    %173 = arith.divf %170, %172 : vector<16x32xf32>
    %174 = arith.mulf %173, %62 : vector<16x32xf32>
    %175 = vector.broadcast %10 : vector<1x32xf32> to vector<16x32xf32>
    %176 = arith.subf %175, %0 : vector<16x32xf32>
    %177 = arith.subf %10, %9 : vector<1x32xf32>
    %178 = vector.broadcast %177 : vector<1x32xf32> to vector<16x32xf32>
    %179 = arith.divf %176, %178 : vector<16x32xf32>
    %180 = arith.mulf %179, %69 : vector<16x32xf32>
    %181 = arith.addf %174, %180 : vector<16x32xf32>
    %182 = vector.broadcast %9 : vector<1x32xf32> to vector<16x32xf32>
    %183 = arith.subf %0, %182 : vector<16x32xf32>
    %184 = arith.subf %10, %9 : vector<1x32xf32>
    %185 = vector.broadcast %184 : vector<1x32xf32> to vector<16x32xf32>
    %186 = arith.divf %183, %185 : vector<16x32xf32>
    %187 = arith.mulf %186, %69 : vector<16x32xf32>
    %188 = vector.broadcast %11 : vector<1x32xf32> to vector<16x32xf32>
    %189 = arith.subf %188, %0 : vector<16x32xf32>
    %190 = arith.subf %11, %10 : vector<1x32xf32>
    %191 = vector.broadcast %190 : vector<1x32xf32> to vector<16x32xf32>
    %192 = arith.divf %189, %191 : vector<16x32xf32>
    %193 = arith.mulf %192, %76 : vector<16x32xf32>
    %194 = arith.addf %187, %193 : vector<16x32xf32>
    %195 = vector.broadcast %10 : vector<1x32xf32> to vector<16x32xf32>
    %196 = arith.subf %0, %195 : vector<16x32xf32>
    %197 = arith.subf %11, %10 : vector<1x32xf32>
    %198 = vector.broadcast %197 : vector<1x32xf32> to vector<16x32xf32>
    %199 = arith.divf %196, %198 : vector<16x32xf32>
    %200 = arith.mulf %199, %76 : vector<16x32xf32>
    %201 = vector.broadcast %12 : vector<1x32xf32> to vector<16x32xf32>
    %202 = arith.subf %201, %0 : vector<16x32xf32>
    %203 = arith.subf %12, %11 : vector<1x32xf32>
    %204 = vector.broadcast %203 : vector<1x32xf32> to vector<16x32xf32>
    %205 = arith.divf %202, %204 : vector<16x32xf32>
    %206 = arith.mulf %205, %83 : vector<16x32xf32>
    %207 = arith.addf %200, %206 : vector<16x32xf32>
    %208 = vector.broadcast %11 : vector<1x32xf32> to vector<16x32xf32>
    %209 = arith.subf %0, %208 : vector<16x32xf32>
    %210 = arith.subf %12, %11 : vector<1x32xf32>
    %211 = vector.broadcast %210 : vector<1x32xf32> to vector<16x32xf32>
    %212 = arith.divf %209, %211 : vector<16x32xf32>
    %213 = arith.mulf %212, %83 : vector<16x32xf32>
    %214 = vector.broadcast %13 : vector<1x32xf32> to vector<16x32xf32>
    %215 = arith.subf %214, %0 : vector<16x32xf32>
    %216 = arith.subf %13, %12 : vector<1x32xf32>
    %217 = vector.broadcast %216 : vector<1x32xf32> to vector<16x32xf32>
    %218 = arith.divf %215, %217 : vector<16x32xf32>
    %219 = arith.mulf %218, %90 : vector<16x32xf32>
    %220 = arith.addf %213, %219 : vector<16x32xf32>
    %221 = vector.broadcast %2 : vector<1x32xf32> to vector<16x32xf32>
    %222 = arith.subf %0, %221 : vector<16x32xf32>
    %223 = arith.subf %4, %2 : vector<1x32xf32>
    %224 = vector.broadcast %223 : vector<1x32xf32> to vector<16x32xf32>
    %225 = arith.divf %222, %224 : vector<16x32xf32>
    %226 = arith.mulf %225, %103 : vector<16x32xf32>
    %227 = vector.broadcast %5 : vector<1x32xf32> to vector<16x32xf32>
    %228 = arith.subf %227, %0 : vector<16x32xf32>
    %229 = arith.subf %5, %3 : vector<1x32xf32>
    %230 = vector.broadcast %229 : vector<1x32xf32> to vector<16x32xf32>
    %231 = arith.divf %228, %230 : vector<16x32xf32>
    %232 = arith.mulf %231, %116 : vector<16x32xf32>
    %233 = arith.addf %226, %232 : vector<16x32xf32>
    %234 = vector.broadcast %3 : vector<1x32xf32> to vector<16x32xf32>
    %235 = arith.subf %0, %234 : vector<16x32xf32>
    %236 = arith.subf %5, %3 : vector<1x32xf32>
    %237 = vector.broadcast %236 : vector<1x32xf32> to vector<16x32xf32>
    %238 = arith.divf %235, %237 : vector<16x32xf32>
    %239 = arith.mulf %238, %116 : vector<16x32xf32>
    %240 = vector.broadcast %6 : vector<1x32xf32> to vector<16x32xf32>
    %241 = arith.subf %240, %0 : vector<16x32xf32>
    %242 = arith.subf %6, %4 : vector<1x32xf32>
    %243 = vector.broadcast %242 : vector<1x32xf32> to vector<16x32xf32>
    %244 = arith.divf %241, %243 : vector<16x32xf32>
    %245 = arith.mulf %244, %129 : vector<16x32xf32>
    %246 = arith.addf %239, %245 : vector<16x32xf32>
    %247 = vector.broadcast %4 : vector<1x32xf32> to vector<16x32xf32>
    %248 = arith.subf %0, %247 : vector<16x32xf32>
    %249 = arith.subf %6, %4 : vector<1x32xf32>
    %250 = vector.broadcast %249 : vector<1x32xf32> to vector<16x32xf32>
    %251 = arith.divf %248, %250 : vector<16x32xf32>
    %252 = arith.mulf %251, %129 : vector<16x32xf32>
    %253 = vector.broadcast %7 : vector<1x32xf32> to vector<16x32xf32>
    %254 = arith.subf %253, %0 : vector<16x32xf32>
    %255 = arith.subf %7, %5 : vector<1x32xf32>
    %256 = vector.broadcast %255 : vector<1x32xf32> to vector<16x32xf32>
    %257 = arith.divf %254, %256 : vector<16x32xf32>
    %258 = arith.mulf %257, %142 : vector<16x32xf32>
    %259 = arith.addf %252, %258 : vector<16x32xf32>
    %260 = vector.broadcast %5 : vector<1x32xf32> to vector<16x32xf32>
    %261 = arith.subf %0, %260 : vector<16x32xf32>
    %262 = arith.subf %7, %5 : vector<1x32xf32>
    %263 = vector.broadcast %262 : vector<1x32xf32> to vector<16x32xf32>
    %264 = arith.divf %261, %263 : vector<16x32xf32>
    %265 = arith.mulf %264, %142 : vector<16x32xf32>
    %266 = vector.broadcast %8 : vector<1x32xf32> to vector<16x32xf32>
    %267 = arith.subf %266, %0 : vector<16x32xf32>
    %268 = arith.subf %8, %6 : vector<1x32xf32>
    %269 = vector.broadcast %268 : vector<1x32xf32> to vector<16x32xf32>
    %270 = arith.divf %267, %269 : vector<16x32xf32>
    %271 = arith.mulf %270, %155 : vector<16x32xf32>
    %272 = arith.addf %265, %271 : vector<16x32xf32>
    %273 = vector.broadcast %6 : vector<1x32xf32> to vector<16x32xf32>
    %274 = arith.subf %0, %273 : vector<16x32xf32>
    %275 = arith.subf %8, %6 : vector<1x32xf32>
    %276 = vector.broadcast %275 : vector<1x32xf32> to vector<16x32xf32>
    %277 = arith.divf %274, %276 : vector<16x32xf32>
    %278 = arith.mulf %277, %155 : vector<16x32xf32>
    %279 = vector.broadcast %9 : vector<1x32xf32> to vector<16x32xf32>
    %280 = arith.subf %279, %0 : vector<16x32xf32>
    %281 = arith.subf %9, %7 : vector<1x32xf32>
    %282 = vector.broadcast %281 : vector<1x32xf32> to vector<16x32xf32>
    %283 = arith.divf %280, %282 : vector<16x32xf32>
    %284 = arith.mulf %283, %168 : vector<16x32xf32>
    %285 = arith.addf %278, %284 : vector<16x32xf32>
    %286 = vector.broadcast %7 : vector<1x32xf32> to vector<16x32xf32>
    %287 = arith.subf %0, %286 : vector<16x32xf32>
    %288 = arith.subf %9, %7 : vector<1x32xf32>
    %289 = vector.broadcast %288 : vector<1x32xf32> to vector<16x32xf32>
    %290 = arith.divf %287, %289 : vector<16x32xf32>
    %291 = arith.mulf %290, %168 : vector<16x32xf32>
    %292 = vector.broadcast %10 : vector<1x32xf32> to vector<16x32xf32>
    %293 = arith.subf %292, %0 : vector<16x32xf32>
    %294 = arith.subf %10, %8 : vector<1x32xf32>
    %295 = vector.broadcast %294 : vector<1x32xf32> to vector<16x32xf32>
    %296 = arith.divf %293, %295 : vector<16x32xf32>
    %297 = arith.mulf %296, %181 : vector<16x32xf32>
    %298 = arith.addf %291, %297 : vector<16x32xf32>
    %299 = vector.broadcast %8 : vector<1x32xf32> to vector<16x32xf32>
    %300 = arith.subf %0, %299 : vector<16x32xf32>
    %301 = arith.subf %10, %8 : vector<1x32xf32>
    %302 = vector.broadcast %301 : vector<1x32xf32> to vector<16x32xf32>
    %303 = arith.divf %300, %302 : vector<16x32xf32>
    %304 = arith.mulf %303, %181 : vector<16x32xf32>
    %305 = vector.broadcast %11 : vector<1x32xf32> to vector<16x32xf32>
    %306 = arith.subf %305, %0 : vector<16x32xf32>
    %307 = arith.subf %11, %9 : vector<1x32xf32>
    %308 = vector.broadcast %307 : vector<1x32xf32> to vector<16x32xf32>
    %309 = arith.divf %306, %308 : vector<16x32xf32>
    %310 = arith.mulf %309, %194 : vector<16x32xf32>
    %311 = arith.addf %304, %310 : vector<16x32xf32>
    %312 = vector.broadcast %9 : vector<1x32xf32> to vector<16x32xf32>
    %313 = arith.subf %0, %312 : vector<16x32xf32>
    %314 = arith.subf %11, %9 : vector<1x32xf32>
    %315 = vector.broadcast %314 : vector<1x32xf32> to vector<16x32xf32>
    %316 = arith.divf %313, %315 : vector<16x32xf32>
    %317 = arith.mulf %316, %194 : vector<16x32xf32>
    %318 = vector.broadcast %12 : vector<1x32xf32> to vector<16x32xf32>
    %319 = arith.subf %318, %0 : vector<16x32xf32>
    %320 = arith.subf %12, %10 : vector<1x32xf32>
    %321 = vector.broadcast %320 : vector<1x32xf32> to vector<16x32xf32>
    %322 = arith.divf %319, %321 : vector<16x32xf32>
    %323 = arith.mulf %322, %207 : vector<16x32xf32>
    %324 = arith.addf %317, %323 : vector<16x32xf32>
    %325 = vector.broadcast %10 : vector<1x32xf32> to vector<16x32xf32>
    %326 = arith.subf %0, %325 : vector<16x32xf32>
    %327 = arith.subf %12, %10 : vector<1x32xf32>
    %328 = vector.broadcast %327 : vector<1x32xf32> to vector<16x32xf32>
    %329 = arith.divf %326, %328 : vector<16x32xf32>
    %330 = arith.mulf %329, %207 : vector<16x32xf32>
    %331 = vector.broadcast %13 : vector<1x32xf32> to vector<16x32xf32>
    %332 = arith.subf %331, %0 : vector<16x32xf32>
    %333 = arith.subf %13, %11 : vector<1x32xf32>
    %334 = vector.broadcast %333 : vector<1x32xf32> to vector<16x32xf32>
    %335 = arith.divf %332, %334 : vector<16x32xf32>
    %336 = arith.mulf %335, %220 : vector<16x32xf32>
    %337 = arith.addf %330, %336 : vector<16x32xf32>
    %338 = vector.broadcast %2 : vector<1x32xf32> to vector<16x32xf32>
    %339 = arith.subf %0, %338 : vector<16x32xf32>
    %340 = arith.subf %5, %2 : vector<1x32xf32>
    %341 = vector.broadcast %340 : vector<1x32xf32> to vector<16x32xf32>
    %342 = arith.divf %339, %341 : vector<16x32xf32>
    %343 = arith.mulf %342, %233 : vector<16x32xf32>
    %344 = vector.broadcast %6 : vector<1x32xf32> to vector<16x32xf32>
    %345 = arith.subf %344, %0 : vector<16x32xf32>
    %346 = arith.subf %6, %3 : vector<1x32xf32>
    %347 = vector.broadcast %346 : vector<1x32xf32> to vector<16x32xf32>
    %348 = arith.divf %345, %347 : vector<16x32xf32>
    %349 = arith.mulf %348, %246 : vector<16x32xf32>
    %350 = arith.addf %343, %349 : vector<16x32xf32>
    %351 = vector.broadcast %3 : vector<1x32xf32> to vector<16x32xf32>
    %352 = arith.subf %0, %351 : vector<16x32xf32>
    %353 = arith.subf %6, %3 : vector<1x32xf32>
    %354 = vector.broadcast %353 : vector<1x32xf32> to vector<16x32xf32>
    %355 = arith.divf %352, %354 : vector<16x32xf32>
    %356 = arith.mulf %355, %246 : vector<16x32xf32>
    %357 = vector.broadcast %7 : vector<1x32xf32> to vector<16x32xf32>
    %358 = arith.subf %357, %0 : vector<16x32xf32>
    %359 = arith.subf %7, %4 : vector<1x32xf32>
    %360 = vector.broadcast %359 : vector<1x32xf32> to vector<16x32xf32>
    %361 = arith.divf %358, %360 : vector<16x32xf32>
    %362 = arith.mulf %361, %259 : vector<16x32xf32>
    %363 = arith.addf %356, %362 : vector<16x32xf32>
    %364 = vector.broadcast %4 : vector<1x32xf32> to vector<16x32xf32>
    %365 = arith.subf %0, %364 : vector<16x32xf32>
    %366 = arith.subf %7, %4 : vector<1x32xf32>
    %367 = vector.broadcast %366 : vector<1x32xf32> to vector<16x32xf32>
    %368 = arith.divf %365, %367 : vector<16x32xf32>
    %369 = arith.mulf %368, %259 : vector<16x32xf32>
    %370 = vector.broadcast %8 : vector<1x32xf32> to vector<16x32xf32>
    %371 = arith.subf %370, %0 : vector<16x32xf32>
    %372 = arith.subf %8, %5 : vector<1x32xf32>
    %373 = vector.broadcast %372 : vector<1x32xf32> to vector<16x32xf32>
    %374 = arith.divf %371, %373 : vector<16x32xf32>
    %375 = arith.mulf %374, %272 : vector<16x32xf32>
    %376 = arith.addf %369, %375 : vector<16x32xf32>
    %377 = vector.broadcast %5 : vector<1x32xf32> to vector<16x32xf32>
    %378 = arith.subf %0, %377 : vector<16x32xf32>
    %379 = arith.subf %8, %5 : vector<1x32xf32>
    %380 = vector.broadcast %379 : vector<1x32xf32> to vector<16x32xf32>
    %381 = arith.divf %378, %380 : vector<16x32xf32>
    %382 = arith.mulf %381, %272 : vector<16x32xf32>
    %383 = vector.broadcast %9 : vector<1x32xf32> to vector<16x32xf32>
    %384 = arith.subf %383, %0 : vector<16x32xf32>
    %385 = arith.subf %9, %6 : vector<1x32xf32>
    %386 = vector.broadcast %385 : vector<1x32xf32> to vector<16x32xf32>
    %387 = arith.divf %384, %386 : vector<16x32xf32>
    %388 = arith.mulf %387, %285 : vector<16x32xf32>
    %389 = arith.addf %382, %388 : vector<16x32xf32>
    %390 = vector.broadcast %6 : vector<1x32xf32> to vector<16x32xf32>
    %391 = arith.subf %0, %390 : vector<16x32xf32>
    %392 = arith.subf %9, %6 : vector<1x32xf32>
    %393 = vector.broadcast %392 : vector<1x32xf32> to vector<16x32xf32>
    %394 = arith.divf %391, %393 : vector<16x32xf32>
    %395 = arith.mulf %394, %285 : vector<16x32xf32>
    %396 = vector.broadcast %10 : vector<1x32xf32> to vector<16x32xf32>
    %397 = arith.subf %396, %0 : vector<16x32xf32>
    %398 = arith.subf %10, %7 : vector<1x32xf32>
    %399 = vector.broadcast %398 : vector<1x32xf32> to vector<16x32xf32>
    %400 = arith.divf %397, %399 : vector<16x32xf32>
    %401 = arith.mulf %400, %298 : vector<16x32xf32>
    %402 = arith.addf %395, %401 : vector<16x32xf32>
    %403 = vector.broadcast %7 : vector<1x32xf32> to vector<16x32xf32>
    %404 = arith.subf %0, %403 : vector<16x32xf32>
    %405 = arith.subf %10, %7 : vector<1x32xf32>
    %406 = vector.broadcast %405 : vector<1x32xf32> to vector<16x32xf32>
    %407 = arith.divf %404, %406 : vector<16x32xf32>
    %408 = arith.mulf %407, %298 : vector<16x32xf32>
    %409 = vector.broadcast %11 : vector<1x32xf32> to vector<16x32xf32>
    %410 = arith.subf %409, %0 : vector<16x32xf32>
    %411 = arith.subf %11, %8 : vector<1x32xf32>
    %412 = vector.broadcast %411 : vector<1x32xf32> to vector<16x32xf32>
    %413 = arith.divf %410, %412 : vector<16x32xf32>
    %414 = arith.mulf %413, %311 : vector<16x32xf32>
    %415 = arith.addf %408, %414 : vector<16x32xf32>
    %416 = vector.broadcast %8 : vector<1x32xf32> to vector<16x32xf32>
    %417 = arith.subf %0, %416 : vector<16x32xf32>
    %418 = arith.subf %11, %8 : vector<1x32xf32>
    %419 = vector.broadcast %418 : vector<1x32xf32> to vector<16x32xf32>
    %420 = arith.divf %417, %419 : vector<16x32xf32>
    %421 = arith.mulf %420, %311 : vector<16x32xf32>
    %422 = vector.broadcast %12 : vector<1x32xf32> to vector<16x32xf32>
    %423 = arith.subf %422, %0 : vector<16x32xf32>
    %424 = arith.subf %12, %9 : vector<1x32xf32>
    %425 = vector.broadcast %424 : vector<1x32xf32> to vector<16x32xf32>
    %426 = arith.divf %423, %425 : vector<16x32xf32>
    %427 = arith.mulf %426, %324 : vector<16x32xf32>
    %428 = arith.addf %421, %427 : vector<16x32xf32>
    %429 = vector.broadcast %9 : vector<1x32xf32> to vector<16x32xf32>
    %430 = arith.subf %0, %429 : vector<16x32xf32>
    %431 = arith.subf %12, %9 : vector<1x32xf32>
    %432 = vector.broadcast %431 : vector<1x32xf32> to vector<16x32xf32>
    %433 = arith.divf %430, %432 : vector<16x32xf32>
    %434 = arith.mulf %433, %324 : vector<16x32xf32>
    %435 = vector.broadcast %13 : vector<1x32xf32> to vector<16x32xf32>
    %436 = arith.subf %435, %0 : vector<16x32xf32>
    %437 = arith.subf %13, %10 : vector<1x32xf32>
    %438 = vector.broadcast %437 : vector<1x32xf32> to vector<16x32xf32>
    %439 = arith.divf %436, %438 : vector<16x32xf32>
    %440 = arith.mulf %439, %337 : vector<16x32xf32>
    %441 = arith.addf %434, %440 : vector<16x32xf32>
    %442 = arith.negf %0 : vector<16x32xf32>
    %443 = math.exp %442 : vector<16x32xf32>
    %cst = arith.constant 1.000000e+00 : f32
    %444 = vector.broadcast %cst : f32 to vector<16x32xf32>
    %445 = arith.addf %444, %443 : vector<16x32xf32>
    %446 = arith.divf %444, %445 : vector<16x32xf32>
    %447 = arith.mulf %0, %446 : vector<16x32xf32>
    %c0_3 = arith.constant 0 : index
    %c0_4 = arith.constant 0 : index
    %448 = vector.load %arg3[%c0_3, %c0_4] : memref<32x16xf32, #tpu.memory_space<vmem>>, vector<32x16xf32>
    %cst_5 = arith.constant dense<0.000000e+00> : vector<16x16xf32>
    %449 = tpu.matmul %447, %448, %cst_5 {dimension_numbers = #tpu.dot_dimension_numbers<[1], [0], [0], [1], [0, 0, 1, 1], [], []>} : vector<16x32xf32>, vector<32x16xf32>, vector<16x16xf32> -> vector<16x16xf32>
    %c0_6 = arith.constant 0 : index
    %c0_7 = arith.constant 0 : index
    %450 = vector.load %arg5[%c0_6, %c0_7] : memref<32x16xf32, #tpu.memory_space<vmem>>, vector<32x16xf32>
    %cst_8 = arith.constant dense<0.000000e+00> : vector<16x16xf32>
    %451 = tpu.matmul %0, %450, %cst_8 {dimension_numbers = #tpu.dot_dimension_numbers<[1], [0], [0], [1], [0, 0, 1, 1], [], []>} : vector<16x32xf32>, vector<32x16xf32>, vector<16x16xf32> -> vector<16x16xf32>
    %452 = arith.addf %449, %451 : vector<16x16xf32>
    %c0_9 = arith.constant 0 : index
    %c0_10 = arith.constant 0 : index
    %453 = vector.load %arg6[%c0_9, %c0_10] : memref<1x16xf32, #tpu.memory_space<vmem>>, vector<1x16xf32>
    %454 = vector.broadcast %453 : vector<1x16xf32> to vector<16x16xf32>
    %455 = arith.addf %452, %454 : vector<16x16xf32>
    %c0_11 = arith.constant 0 : index
    %c0_12 = arith.constant 0 : index
    %c0_13 = arith.constant 0 : index
    %456 = vector.load %arg4[%c0_11, %c0_12, %c0_13] : memref<8x32x16xf32, #tpu.memory_space<vmem>>, vector<1x32x16xf32>
    %457 = vector.shape_cast %456 : vector<1x32x16xf32> to vector<32x16xf32>
    %cst_14 = arith.constant dense<0.000000e+00> : vector<16x16xf32>
    %458 = tpu.matmul %350, %457, %cst_14 {dimension_numbers = #tpu.dot_dimension_numbers<[1], [0], [0], [1], [0, 0, 1, 1], [], []>} : vector<16x32xf32>, vector<32x16xf32>, vector<16x16xf32> -> vector<16x16xf32>
    %459 = arith.addf %455, %458 : vector<16x16xf32>
    %c1 = arith.constant 1 : index
    %c0_15 = arith.constant 0 : index
    %c0_16 = arith.constant 0 : index
    %460 = vector.load %arg4[%c1, %c0_15, %c0_16] : memref<8x32x16xf32, #tpu.memory_space<vmem>>, vector<1x32x16xf32>
    %461 = vector.shape_cast %460 : vector<1x32x16xf32> to vector<32x16xf32>
    %cst_17 = arith.constant dense<0.000000e+00> : vector<16x16xf32>
    %462 = tpu.matmul %363, %461, %cst_17 {dimension_numbers = #tpu.dot_dimension_numbers<[1], [0], [0], [1], [0, 0, 1, 1], [], []>} : vector<16x32xf32>, vector<32x16xf32>, vector<16x16xf32> -> vector<16x16xf32>
    %463 = arith.addf %459, %462 : vector<16x16xf32>
    %c2 = arith.constant 2 : index
    %c0_18 = arith.constant 0 : index
    %c0_19 = arith.constant 0 : index
    %464 = vector.load %arg4[%c2, %c0_18, %c0_19] : memref<8x32x16xf32, #tpu.memory_space<vmem>>, vector<1x32x16xf32>
    %465 = vector.shape_cast %464 : vector<1x32x16xf32> to vector<32x16xf32>
    %cst_20 = arith.constant dense<0.000000e+00> : vector<16x16xf32>
    %466 = tpu.matmul %376, %465, %cst_20 {dimension_numbers = #tpu.dot_dimension_numbers<[1], [0], [0], [1], [0, 0, 1, 1], [], []>} : vector<16x32xf32>, vector<32x16xf32>, vector<16x16xf32> -> vector<16x16xf32>
    %467 = arith.addf %463, %466 : vector<16x16xf32>
    %c3 = arith.constant 3 : index
    %c0_21 = arith.constant 0 : index
    %c0_22 = arith.constant 0 : index
    %468 = vector.load %arg4[%c3, %c0_21, %c0_22] : memref<8x32x16xf32, #tpu.memory_space<vmem>>, vector<1x32x16xf32>
    %469 = vector.shape_cast %468 : vector<1x32x16xf32> to vector<32x16xf32>
    %cst_23 = arith.constant dense<0.000000e+00> : vector<16x16xf32>
    %470 = tpu.matmul %389, %469, %cst_23 {dimension_numbers = #tpu.dot_dimension_numbers<[1], [0], [0], [1], [0, 0, 1, 1], [], []>} : vector<16x32xf32>, vector<32x16xf32>, vector<16x16xf32> -> vector<16x16xf32>
    %471 = arith.addf %467, %470 : vector<16x16xf32>
    %c4 = arith.constant 4 : index
    %c0_24 = arith.constant 0 : index
    %c0_25 = arith.constant 0 : index
    %472 = vector.load %arg4[%c4, %c0_24, %c0_25] : memref<8x32x16xf32, #tpu.memory_space<vmem>>, vector<1x32x16xf32>
    %473 = vector.shape_cast %472 : vector<1x32x16xf32> to vector<32x16xf32>
    %cst_26 = arith.constant dense<0.000000e+00> : vector<16x16xf32>
    %474 = tpu.matmul %402, %473, %cst_26 {dimension_numbers = #tpu.dot_dimension_numbers<[1], [0], [0], [1], [0, 0, 1, 1], [], []>} : vector<16x32xf32>, vector<32x16xf32>, vector<16x16xf32> -> vector<16x16xf32>
    %475 = arith.addf %471, %474 : vector<16x16xf32>
    %c5 = arith.constant 5 : index
    %c0_27 = arith.constant 0 : index
    %c0_28 = arith.constant 0 : index
    %476 = vector.load %arg4[%c5, %c0_27, %c0_28] : memref<8x32x16xf32, #tpu.memory_space<vmem>>, vector<1x32x16xf32>
    %477 = vector.shape_cast %476 : vector<1x32x16xf32> to vector<32x16xf32>
    %cst_29 = arith.constant dense<0.000000e+00> : vector<16x16xf32>
    %478 = tpu.matmul %415, %477, %cst_29 {dimension_numbers = #tpu.dot_dimension_numbers<[1], [0], [0], [1], [0, 0, 1, 1], [], []>} : vector<16x32xf32>, vector<32x16xf32>, vector<16x16xf32> -> vector<16x16xf32>
    %479 = arith.addf %475, %478 : vector<16x16xf32>
    %c6 = arith.constant 6 : index
    %c0_30 = arith.constant 0 : index
    %c0_31 = arith.constant 0 : index
    %480 = vector.load %arg4[%c6, %c0_30, %c0_31] : memref<8x32x16xf32, #tpu.memory_space<vmem>>, vector<1x32x16xf32>
    %481 = vector.shape_cast %480 : vector<1x32x16xf32> to vector<32x16xf32>
    %cst_32 = arith.constant dense<0.000000e+00> : vector<16x16xf32>
    %482 = tpu.matmul %428, %481, %cst_32 {dimension_numbers = #tpu.dot_dimension_numbers<[1], [0], [0], [1], [0, 0, 1, 1], [], []>} : vector<16x32xf32>, vector<32x16xf32>, vector<16x16xf32> -> vector<16x16xf32>
    %483 = arith.addf %479, %482 : vector<16x16xf32>
    %c7 = arith.constant 7 : index
    %c0_33 = arith.constant 0 : index
    %c0_34 = arith.constant 0 : index
    %484 = vector.load %arg4[%c7, %c0_33, %c0_34] : memref<8x32x16xf32, #tpu.memory_space<vmem>>, vector<1x32x16xf32>
    %485 = vector.shape_cast %484 : vector<1x32x16xf32> to vector<32x16xf32>
    %cst_35 = arith.constant dense<0.000000e+00> : vector<16x16xf32>
    %486 = tpu.matmul %441, %485, %cst_35 {dimension_numbers = #tpu.dot_dimension_numbers<[1], [0], [0], [1], [0, 0, 1, 1], [], []>} : vector<16x32xf32>, vector<32x16xf32>, vector<16x16xf32> -> vector<16x16xf32>
    %487 = arith.addf %483, %486 : vector<16x16xf32>
    %c0_36 = arith.constant 0 : index
    %c0_37 = arith.constant 0 : index
    %488 = vector.load %arg7[%c0_36, %c0_37] : memref<16x16xf32, #tpu.memory_space<vmem>>, vector<16x16xf32>
    tpu.vector_store %arg7[%c0_36, %c0_37], %487 {strides = array<i32>} : memref<16x16xf32, #tpu.memory_space<vmem>>, vector<16x16xf32>,
    return
  }
  func.func @transform_0(%arg0: i32) -> (i32, i32) {
    %c0_i32 = arith.constant 0 : i32
    %c0_i32_0 = arith.constant 0 : i32
    return %arg0, %c0_i32 : i32, i32
  }
  func.func @transform_1(%arg0: i32) -> (i32, i32) {
    %c0_i32 = arith.constant 0 : i32
    %c0_i32_0 = arith.constant 0 : i32
    %c0_i32_1 = arith.constant 0 : i32
    return %c0_i32, %c0_i32_0 : i32, i32
  }
  func.func @transform_2(%arg0: i32) -> (i32, i32) {
    %c0_i32 = arith.constant 0 : i32
    %c0_i32_0 = arith.constant 0 : i32
    %c0_i32_1 = arith.constant 0 : i32
    return %c0_i32, %c0_i32_0 : i32, i32
  }
  func.func @transform_3(%arg0: i32) -> (i32, i32, i32) {
    %c0_i32 = arith.constant 0 : i32
    %c0_i32_0 = arith.constant 0 : i32
    %c0_i32_1 = arith.constant 0 : i32
    %c0_i32_2 = arith.constant 0 : i32
    return %c0_i32, %c0_i32_0, %c0_i32_1 : i32, i32, i32
  }
  func.func @transform_4(%arg0: i32) -> (i32, i32) {
    %c0_i32 = arith.constant 0 : i32
    %c0_i32_0 = arith.constant 0 : i32
    %c0_i32_1 = arith.constant 0 : i32
    return %c0_i32, %c0_i32_0 : i32, i32
  }
  func.func @transform_5(%arg0: i32) -> (i32, i32) {
    %c0_i32 = arith.constant 0 : i32
    %c0_i32_0 = arith.constant 0 : i32
    %c0_i32_1 = arith.constant 0 : i32
    return %c0_i32, %c0_i32_0 : i32, i32
  }
  func.func @transform_6(%arg0: i32) -> (i32, i32) {
    %c0_i32 = arith.constant 0 : i32
    %c0_i32_0 = arith.constant 0 : i32
    return %arg0, %c0_i32 : i32, i32
  }
}

</mosaic_0001>

<bundles_post_ra>
// kernel: tpu_custom_call.1
= control target key start
LH: loop header
LB: loop body
LE: loop exit
PB: predicated region body
PF: predicated region fallthrough
CT: control target
= control target key end

     0   :  { %vm981_vm0 = vcmask 261120   ;;  %s3179_s0 = inlined_call_operand.vmem [shape: f32[16,32], index: 0, kind: input, shape index: {}]   ;;  %s3180_s1 = inlined_call_operand.vmem [shape: f32[12,32], index: 1, kind: input, shape index: {}]   ;;  %s3181_s2 = inlined_call_operand.vmem [shape: f32[32,16], index: 2, kind: input, shape index: {}]   ;;  %s3182_s3 = inlined_call_operand.vmem [shape: f32[8,32,16], index: 3, kind: input, shape index: {}]   ;;  %s3183_s4 = inlined_call_operand.vmem [shape: f32[32,16], index: 4, kind: input, shape index: {}]   ;;  %s3184_s5 = inlined_call_operand.vmem [shape: f32[1,16], index: 5, kind: input, shape index: {}]   ;;  %s3185_s6 = inlined_call_operand.hbm [shape: f32[16,16], index: 6, kind: output, shape index: {}]  }
   0x1   :  { %v980_v0 = vld [vmem:[%s3183_s4 + $0x18] sm:$0xff]  ;;  %v979_v2 = vld [vmem:[%s3183_s4 + $0x10] sm:$0xff]  ;;  %v978_v4 = vld [vmem:[%s3183_s4 + $0x8] sm:$0xff] }
   0x2   :  { %v976_v1 = vld [vmem:[%s3181_s2 + $0x18] sm:$0xff]  ;;  %1426 = vmatpush.msra.mxu2 %v980_v0  ;;  %v975_v3 = vld [vmem:[%s3181_s2 + $0x10] sm:$0xff]  ;;  %v974_v5 = vld [vmem:[%s3181_s2 + $0x8] sm:$0xff]  ;;  %1000 = vmatpush.msra.mxu0 %v980_v0 }
   0x3   :  { %1430 = vmatpush.msra.mxu3 %v976_v1  ;;  %v1595_v6 = vld [vmem:[%s3179_s0 + $0x8] sm:$0xff]  ;;  %1029 = vmatpush.msra.mxu1 %v976_v1  ;;  %v977_v8 = vld [vmem:[%s3183_s4] sm:$0xff]  ;;  %v1049_v10 = vld [vmem:[%s3182_s3 + $0x18] sm:$0xff] }
   0x4   :  { %1427 = vmatpush.msra.mxu2 %v979_v2  ;;  %v1377_v7 = vmul.f32 -1.442695, %v1595_v6  ;;  %v973_v9 = vld [vmem:[%s3181_s2] sm:$0xff]  ;;  %1001 = vmatpush.msra.mxu0 %v979_v2  ;;  %v1387_v11 = vld [vmem:[%s3182_s3 + $0x38] sm:$0xff]  ;;  %v1386_v17 = vld [vmem:[%s3182_s3 + $0x30] sm:$0xff] }
   0x5   :  { %1431 = vmatpush.msra.mxu3 %v975_v3  ;;  %1030 = vmatpush.msra.mxu1 %v975_v3  ;;  %v1613_v12 = vld [vmem:[%s3180_s1] sm:$0xff] }
   0x6   :  { %1428 = vmatpush.msra.mxu2 %v978_v4  ;;  %1439 = vpow2.f32 %v1377_v7  ;;  %1002 = vmatpush.msra.mxu0 %v978_v4  ;;  %v1616_v13 = vperm.slane %v1613_v12, 0  ;;  %v1619_v14 = vperm.slane %v1613_v12, 1  ;;  %v1622_v15 = vperm.slane %v1613_v12, 2  ;;  %v1633_v18 = vld [vmem:[%s3179_s0] sm:$0xff] }
   0x7   :  { %1432 = vmatpush.msra.mxu3 %v974_v5  ;;  %1031 = vmatpush.msra.mxu1 %v974_v5  ;;  %v1625_v16 = vperm.slane %v1613_v12, 3  ;;  %v1636_v19 = vperm.slane %v1613_v12, 4  ;;  %v153_v20 = vrot.slane %v1613_v12, 7 }
   0x8   :  { %1429 = vmatpush.msra.mxu2 %v977_v8 }
   0x9   :  { %1433 = vmatpush.msra.mxu3 %v973_v9 }
   0xa   :  { %11 = vsyncpa [#allocation3], 0  ;;  %1379 = vmatmul.msk.f32.vlgmr.msra.gmra.mxu2 %vm981_vm0, %v1595_v6  ;;  %v1048_v21 = vld [vmem:[%s3182_s3 + $0x10] sm:$0xff]  ;;  %vm29_vm1 = vcmp.ge.f32.partialorder %v1633_v18, %v1616_v13  ;;  %vm32_vm2 = vcmp.lt.f32.partialorder %v1633_v18, %v1619_v14  ;;  %vm40_vm3 = vcmp.ge.f32.partialorder %v1633_v18, %v1619_v14  ;;  %v1385_v22 = vld [vmem:[%s3182_s3 + $0x28] sm:$0xff]  ;;  %vm43_vm5 = vcmp.lt.f32.partialorder %v1633_v18, %v1622_v15  ;;  %s1342_s13 = sshll.u32 %s3185_s6, 4  ;;  %s1537_s14 = smov 128   ;;  %s1343_s13 = int_to_ptr.hbm [resolvable:$true] %s1342_s13 }
   0xb   :  { %1104 = vmatpush.msrb.mxu3 %v1387_v11  ;;  %1068 = vmatpush.msrb.mxu2 %v1049_v10  ;;  %vm1653_vm4 = vmand %vm29_vm1, %vm32_vm2  ;;  %vm51_vm6 = vcmp.ge.f32.partialorder %v1633_v18, %v1622_v15  ;;  %vm54_vm7 = vcmp.lt.f32.partialorder %v1633_v18, %v1625_v16  ;;  %v1047_v24 = vld [vmem:[%s3182_s3 + $0x8] sm:$0xff]  ;;  %vm62_vm9 = vcmp.ge.f32.partialorder %v1633_v18, %v1625_v16  ;;  %v464_v28 = vrot.slane %v1613_v12, 6  ;;  %v1046_v30 = vld [vmem:[%s3182_s3] sm:$0xff]  ;;  %s1538_s15 = smov 8  }
   0xc   :  { %vm1666_vm8 = vmand %vm40_vm3, %vm43_vm5  ;;  %vm65_vm10 = vcmp.lt.f32.partialorder %v1633_v18, %v1636_v19  ;;  %v1677_v26 = vsub.f32 %v1613_v12, %v153_v20  ;;  %1003 = vmatpush.msra.mxu0 %v977_v8  ;;  %v1440_v27 = vpop.eup %1439  ;;  %1032 = vmatpush.msra.mxu1 %v973_v9  ;;  %v711_v34 = vrot.slane %v1613_v12, 5  ;;  %v1535_v35 = vmov 0.0  }
   0xd   :  { %1105 = vmatpush.msrb.mxu3 %v1386_v17  ;;  %1069 = vmatpush.msrb.mxu2 %v1048_v21  ;;  %v1680_v29 = vadd.f32 1.0, %v1440_v27  ;;  %vm1691_vm11 = vmand %vm51_vm6, %vm54_vm7  ;;  %v1707_v36 = vsel %vm1653_vm4, 1.0, %v1535_v35  ;;  %v1712_v37 = vsel %vm1666_vm8, 1.0, %v1535_v35  ;;  %v1722_v38 = vsub.f32 %v1633_v18, %v1616_v13 }
   0xe   :  { %v1696_v32 = vperm.slane %v1677_v26, 1  ;;  %v1699_v33 = vperm.slane %v1677_v26, 2  ;;  %1378 = vmatmul.msk.f32.vlgmr.msra.gmra.mxu0 %vm981_vm0, %v1633_v18  ;;  %vm67_vm12 = vmand %vm62_vm9, %vm65_vm10  ;;  %v175_v39 = vsub.f32 %v1622_v15, %v1633_v18  ;;  %v1729_v40 = vsub.f32 %v1633_v18, %v1619_v14 }
   0xf   :  { %1106 = vmatpush.msrb.mxu3 %v1385_v22  ;;  %1070 = vmatpush.msrb.mxu2 %v1047_v24  ;;  %1441 = vrcp.f32 %v1680_v29  ;;  %v1733_v41 = vsub.f32 %v1625_v16, %v1633_v18  ;;  %v1736_v42 = vperm.slane %v1677_v26, 3  ;;  %v965_v43 = vand.u32 2147483647, %v1680_v29 }
  0x10   :  { %v967_v44 = vand.u32 2147483648, %v1680_v29  ;;  %v1743_v45 = vsel %vm1691_vm11, 1.0, %v1535_v35  ;;  %1443 = vrcp.f32 %v1696_v32  ;;  %v1747_v46 = vsel %vm67_vm12, 1.0, %v1535_v35 }
  0x11   :  { %1071 = vmatpush.msrb.mxu2 %v1046_v30  ;;  %v166_v47 = vand.u32 2147483647, %v1696_v32  ;;  %v168_v48 = vand.u32 2147483648, %v1696_v32  ;;  %1445 = vrcp.f32 %v1699_v33  ;;  %v187_v49 = vand.u32 2147483647, %v1699_v33 }
  0x12   :  { %v189_v50 = vand.u32 2147483648, %v1699_v33  ;;  %v1756_v51 = vsub.f32 %v1633_v18, %v1622_v15  ;;  %v1760_v52 = vsub.f32 %v1636_v19, %v1633_v18  ;;  %vm961_vm13 = vweird.f32 %v1680_v29 }
  0x13   :  { %vm162_vm14 = vweird.f32 %v1696_v32  ;;  %1447 = vrcp.f32 %v1736_v42  ;;  %v218_v53 = vand.u32 2147483648, %v1736_v42  ;;  %vm1766_vm15 = vcmp.eq.f32.partialorder %v965_v43, 8.507059e+37 }
  0x14   :  { %v968_v55 = vor.u32 1.1754944e-38, %v967_v44  ;;  %v216_v56 = vand.u32 2147483647, %v1736_v42  ;;  %v1772_v57 = vperm.slane %v1677_v26, 4  ;;  %v1777_v58 = vsub.f32 %v1613_v12, %v464_v28 }
  0x15   :  { %v1442_v59 = vpop.eup %1441  ;;  %vm1779_vm1 = vcmp.eq.f32.partialorder %v166_v47, 8.507059e+37  ;;  %v169_v61 = vor.u32 1.1754944e-38, %v168_v48  ;;  %vm183_vm2 = vweird.f32 %v1699_v33  ;;  %vm212_vm3 = vweird.f32 %v1736_v42 }
  0x16   :  { %v1444_v62 = vpop.eup %1443  ;;  %v957_v63 = vmul.f32 %v1442_v59, %v1680_v29  ;;  %vm1786_vm4 = vcmp.eq.f32.partialorder %v187_v49, 8.507059e+37  ;;  %v190_v1 = vor.u32 1.1754944e-38, %v189_v50  ;;  %1449 = vrcp.f32 %v1772_v57 }
  0x17   :  { %v1446_v2 = vpop.eup %1445  ;;  %v158_v3 = vmul.f32 %v1444_v62, %v1696_v32  ;;  %v219_v4 = vor.u32 1.1754944e-38, %v218_v53  ;;  %v245_v5 = vand.u32 2147483647, %v1772_v57  ;;  %v1796_v7 = vsub.f32 %v1613_v12, %v711_v34 }
  0x18   :  { %v958_v8 = vsub.f32 1.0, %v957_v63  ;;  %vm962_vm5 = vweird.f32 %v1442_v59  ;;  %v179_v9 = vmul.f32 %v1446_v2, %v1699_v33  ;;  %vm1799_vm6 = vcmp.eq.f32.partialorder %v216_v56, 8.507059e+37 }
  0x19   :  { %v1804_v11 = vperm.slane %v1777_v58, 2  ;;  %v1448_v17 = vpop.eup %1447  ;;  %v159_v21 = vsub.f32 1.0, %v158_v3  ;;  %vm163_vm7 = vweird.f32 %v1444_v62  ;;  %vm241_vm8 = vweird.f32 %v1772_v57  ;;  %vm1811_vm10 = vmor %vm961_vm13, %vm962_vm5 }
  0x1a   :  { %v247_v22 = vand.u32 2147483648, %v1772_v57  ;;  %v959_v23 = vmul.f32 %v1442_v59, %v958_v8  ;;  %v180_v24 = vsub.f32 1.0, %v179_v9  ;;  %vm184_vm9 = vweird.f32 %v1446_v2  ;;  %vm1825_vm12 = vmor %vm162_vm14, %vm163_vm7 }
  0x1b   :  { %v208_v25 = vmul.f32 %v1448_v17, %v1736_v42  ;;  %v160_v30 = vmul.f32 %v1444_v62, %v159_v21  ;;  %vm1815_vm11 = vcmp.eq.f32.partialorder %v245_v5, 8.507059e+37  ;;  %1451 = vrcp.f32 %v1804_v11  ;;  %vm1831_vm5 = vmor %vm183_vm2, %vm184_vm9 }
  0x1c   :  { %v1821_v43 = vperm.slane %v1777_v58, 3  ;;  %v1450_v44 = vpop.eup %1449  ;;  %v960_v47 = vadd.f32 %v1442_v59, %v959_v23  ;;  %v181_v48 = vmul.f32 %v1446_v2, %v180_v24  ;;  %vm213_vm13 = vweird.f32 %v1448_v17 }
  0x1d   :  { %v209_v49 = vsub.f32 1.0, %v208_v25  ;;  %v161_v50 = vadd.f32 %v1444_v62, %v160_v30  ;;  %v237_v56 = vmul.f32 %v1450_v44, %v1772_v57  ;;  %v477_v63 = vand.u32 2147483647, %v1804_v11  ;;  %vm1846_vm2 = vmor %vm212_vm3, %vm213_vm13 }
  0x1e   :  { %v479_v32 = vand.u32 2147483648, %v1804_v11  ;;  %v964_v3 = vsel %vm1811_vm10, %v1442_v59, %v960_v47  ;;  %v182_v5 = vadd.f32 %v1446_v2, %v181_v48  ;;  %vm242_vm14 = vweird.f32 %v1450_v44 }
  0x1f   :  { %v210_v8 = vmul.f32 %v1448_v17, %v209_v49  ;;  %v969_v9 = vsel %vm1766_vm15, %v968_v55, %v964_v3  ;;  %v165_v33 = vsel %vm1825_vm12, %v1444_v62, %v161_v50  ;;  %v238_v23 = vsub.f32 1.0, %v237_v56  ;;  %vm1876_vm15 = vmor %vm241_vm8, %vm242_vm14 }
  0x20   :  { %1453 = vrcp.f32 %v1821_v43  ;;  %v972_v59 = vmul.f32 %v969_v9, %v1595_v6  ;;  %v1854_v24 = vsel %vm1779_vm1, %v169_v61, %v165_v33  ;;  %v186_v54 = vsel %vm1831_vm5, %v1446_v2, %v182_v5  ;;  %v1384_v5 = vld [vmem:[%s3182_s3 + $0x20] sm:$0xff] }
  0x21   :  { %v211_v55 = vadd.f32 %v1448_v17, %v210_v8  ;;  %v1452_v62 = vpop.eup %1451  ;;  %v171_v42 = vmul.f32 %v1854_v24, %v1722_v38  ;;  %v1862_v25 = vsel %vm1786_vm4, %v190_v1, %v186_v54  ;;  %v239_v27 = vmul.f32 %v1450_v44, %v238_v23  ;;  %1107 = vmatpush.msrb.mxu3 %v1384_v5 }
  0x22   :  { %v248_v30 = vor.u32 1.1754944e-38, %v247_v22  ;;  %1381 = vmatmul.msk.f32.vlgmr.msra.gmra.mxu3 %vm981_vm0, %v972_v59  ;;  %v192_v60 = vmul.f32 %v1862_v25, %v175_v39  ;;  %v200_v61 = vmul.f32 %v1729_v40, %v1862_v25  ;;  %v469_v1 = vmul.f32 %v1452_v62, %v1804_v11 }
  0x23   :  { %v215_v2 = vsel %vm1846_vm2, %v1448_v17, %v211_v55  ;;  %v240_v39 = vadd.f32 %v1450_v44, %v239_v27  ;;  %vm473_vm1 = vweird.f32 %v1804_v11  ;;  %vm1886_vm3 = vcmp.eq.f32.partialorder %v477_v63, 8.507059e+37 }
  0x24   :  { %v1883_v22 = vsel %vm1799_vm6, %v219_v4, %v215_v2  ;;  %v480_v29 = vor.u32 1.1754944e-38, %v479_v32  ;;  %vm492_vm4 = vweird.f32 %v1821_v43  ;;  %v173_v4 = vmul.f32 %v1707_v36, %v171_v42 }
  0x25   :  { %v221_v57 = vmul.f32 %v1883_v22, %v1733_v41  ;;  %v229_v17 = vmul.f32 %v1756_v51, %v1883_v22  ;;  %v244_v10 = vsel %vm1876_vm15, %v1450_v44, %v240_v39  ;;  %v470_v49 = vsub.f32 1.0, %v469_v1 }
  0x26   :  { %v1454_v48 = vpop.eup %1453  ;;  %vm474_vm6 = vweird.f32 %v1452_v62  ;;  %v194_v50 = vmul.f32 %v1712_v37, %v192_v60  ;;  %v202_v53 = vmul.f32 %v1712_v37, %v200_v61  ;;  %v1902_v56 = vsel %vm1815_vm11, %v248_v30, %v244_v10  ;;  %v1405_v37 = vld [vmem:[%s3182_s3 + $0x98] sm:$0xff] }
  0x27   :  { %v496_v63 = vand.u32 2147483647, %v1821_v43  ;;  %v250_v32 = vmul.f32 %v1902_v56, %v1760_v52  ;;  %v471_v3 = vmul.f32 %v1452_v62, %v470_v49  ;;  %v488_v36 = vmul.f32 %v1454_v48, %v1821_v43  ;;  %vm1919_vm7 = vmor %vm473_vm1, %vm474_vm6  ;;  %1212 = vmatpush.msra.mxu2 %v1405_v37 }
  0x28   :  { %v498_v44 = vand.u32 2147483648, %v1821_v43  ;;  %v223_v31 = vmul.f32 %v1743_v45, %v221_v57  ;;  %v231_v8 = vmul.f32 %v1743_v45, %v229_v17  ;;  %vm493_vm8 = vweird.f32 %v1454_v48 }
  0x29   :  { %v511_v33 = vperm.slane %v1777_v58, 4  ;;  %v252_v21 = vmul.f32 %v1747_v46, %v250_v32  ;;  %v472_v23 = vadd.f32 %v1452_v62, %v471_v3  ;;  %v489_v59 = vsub.f32 1.0, %v488_v36  ;;  %vm1936_vm9 = vmor %vm492_vm4, %vm493_vm8 }
  0x2a   :  { %v714_v54 = vperm.slane %v1796_v7, 3  ;;  %v196_v55 = vadd.f32 %v194_v50, %v173_v4  ;;  %v1376_v11 = vmul.f32 -1.442695, %v1633_v18  ;;  %v225_v60 = vadd.f32 %v223_v31, %v202_v53 }
  0x2b   :  { %1455 = vrcp.f32 %v511_v33  ;;  %v523_v45 = vand.u32 2147483648, %v511_v33  ;;  %v476_v42 = vsel %vm1919_vm7, %v1452_v62, %v472_v23  ;;  %v490_v27 = vmul.f32 %v1454_v48, %v489_v59 }
  0x2c   :  { %v521_v30 = vand.u32 2147483647, %v511_v33  ;;  %1457 = vrcp.f32 %v714_v54  ;;  %v1931_v61 = vsel %vm1886_vm3, %v480_v29, %v476_v42  ;;  %vm1940_vm10 = vcmp.eq.f32.partialorder %v496_v63, 8.507059e+37 }
  0x2d   :  { %v499_v62 = vor.u32 1.1754944e-38, %v498_v44  ;;  %v1944_v1 = vadd.f32 %v252_v21, %v231_v8  ;;  %v482_v39 = vmul.f32 %v1931_v61, %v1722_v38  ;;  %v491_v47 = vadd.f32 %v1454_v48, %v490_v27 }
  0x2e   :  { %vm517_vm11 = vweird.f32 %v511_v33  ;;  %v524_v57 = vor.u32 1.1754944e-38, %v523_v45  ;;  %v724_v17 = vand.u32 2147483647, %v714_v54  ;;  %v733_v43 = vperm.slane %v1796_v7, 4 }
  0x2f   :  { %1459 = vpow2.f32 %v1376_v11  ;;  %v495_v29 = vsel %vm1936_vm9, %v1454_v48, %v491_v47  ;;  %vm1951_vm12 = vcmp.eq.f32.partialorder %v521_v30, 8.507059e+37  ;;  %vm720_vm13 = vweird.f32 %v714_v54 }
  0x30   :  { %v726_v10 = vand.u32 2147483648, %v714_v54  ;;  %vm73_vm5 = vcmp.ge.f32.partialorder %v1633_v18, %v1636_v19  ;;  %v484_v50 = vmul.f32 %v482_v39, %v196_v55  ;;  %v1959_v53 = vsel %vm1940_vm10, %v499_v62, %v495_v29 }
  0x31   :  { %v1456_v49 = vpop.eup %1455  ;;  %1461 = vrcp.f32 %v733_v43  ;;  %v1962_v63 = vperm.slane %v1613_v12, 5  ;;  %v501_v32 = vmul.f32 %v1959_v53, %v1733_v41  ;;  %v507_v3 = vmul.f32 %v1959_v53, %v1729_v40 }
  0x32   :  { %v1458_v48 = vpop.eup %1457  ;;  %v513_v36 = vmul.f32 %v1456_v49, %v511_v33  ;;  %v743_v44 = vand.u32 2147483647, %v733_v43  ;;  %vm518_vm14 = vweird.f32 %v1456_v49  ;;  %vm1968_vm2 = vcmp.eq.f32.partialorder %v724_v17, 8.507059e+37  ;;  %v1399_v33 = vld [vmem:[%s3182_s3 + $0x78] sm:$0xff] }
  0x33   :  { %v716_v5 = vmul.f32 %v1458_v48, %v714_v54  ;;  %v745_v31 = vand.u32 2147483648, %v733_v43  ;;  %v503_v8 = vmul.f32 %v501_v32, %v225_v60  ;;  %vm721_vm15 = vweird.f32 %v1458_v48  ;;  %vm1980_vm4 = vmor %vm517_vm11, %vm518_vm14  ;;  %1176 = vmatpush.msrb.mxu1 %v1399_v33 }
  0x34   :  { %v514_v9 = vsub.f32 1.0, %v513_v36  ;;  %v727_v21 = vor.u32 1.1754944e-38, %v726_v10  ;;  %vm739_vm1 = vweird.f32 %v733_v43  ;;  %vm76_vm3 = vcmp.lt.f32.partialorder %v1633_v18, %v1962_v63  ;;  %vm1996_vm7 = vmor %vm720_vm13, %vm721_vm15 }
  0x35   :  { %v1460_v23 = vpop.eup %1459  ;;  %v717_v59 = vsub.f32 1.0, %v716_v5  ;;  %v1976_v41 = vsub.f32 %v1633_v18, %v1625_v16  ;;  %v509_v55 = vmul.f32 %v507_v3, %v225_v60  ;;  %vm1984_vm6 = vcmp.eq.f32.partialorder %v743_v44, 8.507059e+37  ;;  %vm78_vm8 = vmand %vm73_vm5, %vm76_vm3 }
  0x36   :  { %v515_v45 = vmul.f32 %v1456_v49, %v514_v9  ;;  %v1988_v27 = vor.u32 1.1754944e-38, %v745_v31  ;;  %v1990_v30 = vadd.f32 1.0, %v1460_v23  ;;  %v505_v0 = vadd.f32 %v503_v8, %v484_v50 }
  0x37   :  { %v1992_v2 = vpop.eup %1461  ;;  %v718_v62 = vmul.f32 %v1458_v48, %v717_v59  ;;  %v2002_v60 = vsub.f32 %v1962_v63, %v1633_v18  ;;  %v2005_v39 = vperm.slane %v1677_v26, 5  ;;  %v258_v54 = vmul.f32 %v1976_v41, %v1902_v56  ;;  %v1393_v59 = vld [vmem:[%s3182_s3 + $0x58] sm:$0xff] }
  0x38   :  { %v516_v47 = vadd.f32 %v1456_v49, %v515_v45  ;;  %v735_v17 = vmul.f32 %v1992_v2, %v733_v43  ;;  %1463 = vrcp.f32 %v1990_v30  ;;  %vm740_vm9 = vweird.f32 %v1992_v2  ;;  %v1411_v45 = vld [vmem:[%s3182_s3 + $0xb8] sm:$0xff]  ;;  %1140 = vmatpush.msrb.mxu0 %v1393_v59 }
  0x39   :  { %v719_v29 = vadd.f32 %v1458_v48, %v718_v62  ;;  %v950_v10 = vand.u32 2147483647, %v1990_v30  ;;  %v952_v50 = vand.u32 2147483648, %v1990_v30  ;;  %1465 = vrcp.f32 %v2005_v39  ;;  %vm2044_vm11 = vmor %vm739_vm1, %vm740_vm9  ;;  %1248 = vmatpush.msra.mxu3 %v1411_v45 }
  0x3a   :  { %v520_v32 = vsel %vm1980_vm4, %v1456_v49, %v516_v47  ;;  %v736_v3 = vsub.f32 1.0, %v735_v17  ;;  %v2024_v36 = vperm.slane %v1777_v58, 5  ;;  %vm946_vm10 = vweird.f32 %v1990_v30  ;;  %v1404_v47 = vld [vmem:[%s3182_s3 + $0x90] sm:$0xff] }
  0x3b   :  { %v2028_v44 = vsel %vm1951_vm12, %v524_v57, %v520_v32  ;;  %v723_v5 = vsel %vm1996_vm7, %v1458_v48, %v719_v29  ;;  %v2034_v31 = vsel %vm78_vm8, 1.0, %v1535_v35  ;;  %v2048_v4 = vor.u32 1.1754944e-38, %v952_v50  ;;  %1213 = vmatpush.msra.mxu2 %v1404_v47  ;;  %v1398_v50 = vld [vmem:[%s3182_s3 + $0x70] sm:$0xff]  ;;  %v1397_v57 = vld [vmem:[%s3182_s3 + $0x68] sm:$0xff] }
  0x3c   :  { %v526_v49 = vmul.f32 %v2028_v44, %v1760_v52  ;;  %v2040_v8 = vsel %vm1968_vm2, %v727_v21, %v723_v5  ;;  %v737_v9 = vmul.f32 %v1992_v2, %v736_v3  ;;  %vm2052_vm12 = vcmp.eq.f32.partialorder %v950_v10, 8.507059e+37  ;;  %v1391_v10 = vld [vmem:[%s3182_s3 + $0x48] sm:$0xff]  ;;  %1177 = vmatpush.msrb.mxu1 %v1398_v50 }
  0x3d   :  { %v729_v48 = vmul.f32 %v2040_v8, %v1722_v38  ;;  %v2057_v37 = vmul.f32 %v1747_v46, %v258_v54  ;;  %v274_v21 = vand.u32 2147483647, %v2005_v39  ;;  %v276_v43 = vand.u32 2147483648, %v2005_v39  ;;  %v1392_v38 = vld [vmem:[%s3182_s3 + $0x50] sm:$0xff] }
  0x3e   :  { %v2070_v11 = vpop.eup %1463  ;;  %v528_v46 = vmul.f32 %v526_v49, %v1944_v1  ;;  %v738_v62 = vadd.f32 %v1992_v2, %v737_v9  ;;  %vm270_vm13 = vweird.f32 %v2005_v39  ;;  %1467 = vrcp.f32 %v2024_v36  ;;  %1141 = vmatpush.msrb.mxu0 %v1392_v38  ;;  %1178 = vmatpush.msrb.mxu1 %v1397_v57 }
  0x3f   :  { %v731_v17 = vmul.f32 %v729_v48, %v505_v0  ;;  %v942_v54 = vmul.f32 %v2070_v11, %v1990_v30  ;;  %v532_v29 = vmul.f32 %v2028_v44, %v1756_v51  ;;  %vm542_vm5 = vweird.f32 %v2024_v36  ;;  %v1410_v0 = vld [vmem:[%s3182_s3 + $0xb0] sm:$0xff]  ;;  %v1466_v32 = vpop.eup %1465 }
  0x40   :  { %v530_v3 = vadd.f32 %v528_v46, %v509_v55  ;;  %v742_v5 = vsel %vm2044_vm11, %v1992_v2, %v738_v62  ;;  %vm947_vm14 = vweird.f32 %v2070_v11  ;;  %vm2100_vm2 = vcmp.eq.f32.partialorder %v274_v21, 8.507059e+37  ;;  %1249 = vmatpush.msra.mxu3 %v1410_v0  ;;  %v1390_v2 = vld [vmem:[%s3182_s3 + $0x40] sm:$0xff]  ;;  %v1403_v21 = vld [vmem:[%s3182_s3 + $0x88] sm:$0xff]  ;;  %1142 = vmatpush.msrb.mxu0 %v1391_v10 }
  0x41   :  { %v2107_v9 = vsel %vm1984_vm6, %v1988_v27, %v742_v5  ;;  %v943_v48 = vsub.f32 1.0, %v942_v54  ;;  %v266_v55 = vmul.f32 %v1466_v32, %v2005_v39  ;;  %v277_v59 = vor.u32 1.1754944e-38, %v276_v43  ;;  %1214 = vmatpush.msra.mxu2 %v1403_v21  ;;  %vm2133_vm1 = vmor %vm946_vm10, %vm947_vm14 }
  0x42   :  { %v748_v42 = vmul.f32 %v2107_v9, %v1760_v52  ;;  %v546_v27 = vand.u32 2147483647, %v2024_v36  ;;  %v548_v43 = vand.u32 2147483648, %v2024_v36  ;;  %v754_v45 = vmul.f32 %v2107_v9, %v1729_v40  ;;  %1143 = vmatpush.msrb.mxu0 %v1390_v2 }
  0x43   :  { %v944_v38 = vmul.f32 %v2070_v11, %v943_v48  ;;  %v267_v46 = vsub.f32 1.0, %v266_v55  ;;  %vm271_vm15 = vweird.f32 %v1466_v32  ;;  %v2127_v62 = vperm.slane %v1796_v7, 5 }
  0x44   :  { %v1468_v33 = vpop.eup %1467  ;;  %v750_v47 = vmul.f32 %v748_v42, %v530_v3  ;;  %v2138_v40 = vmul.f32 %v532_v29, %v1944_v1  ;;  %vm2140_vm3 = vcmp.eq.f32.partialorder %v546_v27, 8.507059e+37  ;;  %vm30_vm4 = vcmp.ge.f32.partialorder %v1595_v6, %v1616_v13  ;;  %vm2151_vm6 = vmor %vm270_vm13, %vm271_vm15 }
  0x45   :  { %v945_v10 = vadd.f32 %v2070_v11, %v944_v38  ;;  %v268_v50 = vmul.f32 %v1466_v32, %v267_v46  ;;  %v538_v30 = vmul.f32 %v1468_v33, %v2024_v36  ;;  %v549_v0 = vor.u32 1.1754944e-38, %v548_v43 }
  0x46   :  { %v752_v5 = vadd.f32 %v750_v47, %v731_v17  ;;  %vm543_vm7 = vweird.f32 %v1468_v33  ;;  %v2155_v29 = vmul.f32 %v754_v45, %v530_v3  ;;  %1469 = vrcp.f32 %v2127_v62 }
  0x47   :  { %v949_v48 = vsel %vm2133_vm1, %v2070_v11, %v945_v10  ;;  %v269_v55 = vadd.f32 %v1466_v32, %v268_v50  ;;  %v539_v2 = vsub.f32 1.0, %v538_v30  ;;  %vm764_vm8 = vweird.f32 %v2127_v62 }
  0x48   :  { %v770_v17 = vand.u32 2147483648, %v2127_v62  ;;  %1382 = vmatmul.msk.f32.vlgmr.msrb.gmra.mxu2 %vm981_vm0, %v752_v5  ;;  %v954_v39 = vsel %vm2052_vm12, %v2048_v4, %v949_v48  ;;  %v768_v3 = vand.u32 2147483647, %v2127_v62  ;;  %vm33_vm9 = vcmp.lt.f32.partialorder %v1595_v6, %v1619_v14  ;;  %vm2185_vm12 = vmor %vm542_vm5, %vm543_vm7 }
  0x49   :  { %vm41_vm10 = vcmp.ge.f32.partialorder %v1595_v6, %v1619_v14  ;;  %v971_v11 = vmul.f32 %v954_v39, %v1633_v18  ;;  %v273_v57 = vsel %vm2151_vm6, %v1466_v32, %v269_v55  ;;  %v540_v21 = vmul.f32 %v1468_v33, %v539_v2  ;;  %vm35_vm11 = vmand %vm30_vm4, %vm33_vm9 }
  0x4a   :  { %v771_v42 = vor.u32 1.1754944e-38, %v770_v17  ;;  %v2180_v4 = vsel %vm2100_vm2, %v277_v59, %v273_v57  ;;  %v1355_v27 = vsel %vm35_vm11, 1.0, %v1535_v35  ;;  %vm44_vm13 = vcmp.lt.f32.partialorder %v1595_v6, %v1622_v15 }
  0x4b   :  { %vm52_vm14 = vcmp.ge.f32.partialorder %v1595_v6, %v1622_v15  ;;  %1380 = vmatmul.msk.f32.vlgmr.msra.gmra.mxu1 %vm981_vm0, %v971_v11  ;;  %v279_v32 = vmul.f32 %v2180_v4, %v2002_v60  ;;  %v541_v49 = vadd.f32 %v1468_v33, %v540_v21  ;;  %vm46_vm2 = vmand %vm41_vm10, %vm44_vm13  ;;  %vm55_vm5 = vcmp.lt.f32.partialorder %v1595_v6, %v1625_v16 }
  0x4c   :  { %vm63_vm15 = vcmp.ge.f32.partialorder %v1595_v6, %v1625_v16  ;;  %v1470_v36 = vpop.eup %1469  ;;  %v1357_v59 = vsel %vm46_vm2, 1.0, %v1535_v35  ;;  %vm57_vm1 = vmand %vm52_vm14, %vm55_vm5  ;;  %vm66_vm4 = vcmp.lt.f32.partialorder %v1595_v6, %v1636_v19  ;;  %v151_v43 = vsub.f32 %v1595_v6, %v1616_v13 }
  0x4d   :  { %v176_v45 = vsub.f32 %v1622_v15, %v1595_v6  ;;  %v281_v38 = vmul.f32 %v2034_v31, %v279_v32  ;;  %v545_v46 = vsel %vm2185_vm12, %v1468_v33, %v541_v49  ;;  %v760_v47 = vmul.f32 %v1470_v36, %v2127_v62  ;;  %vm68_vm7 = vmand %vm63_vm15, %vm66_vm4 }
  0x4e   :  { %vm765_vm6 = vweird.f32 %v1470_v36  ;;  %v2214_v52 = vsel %vm2140_vm3, %v549_v0, %v545_v46  ;;  %v1359_v10 = vsel %vm57_vm1, 1.0, %v1535_v35  ;;  %v1361_v13 = vsel %vm68_vm7, 1.0, %v1535_v35 }
  0x4f   :  { %v172_v50 = vmul.f32 %v1854_v24, %v151_v43  ;;  %v2220_v30 = vadd.f32 %v281_v38, %v2057_v37  ;;  %v551_v33 = vmul.f32 %v2214_v52, %v2002_v60  ;;  %v761_v5 = vsub.f32 1.0, %v760_v47  ;;  %vm2239_vm3 = vmor %vm764_vm8, %vm765_vm6 }
  0x50   :  { %v193_v1 = vmul.f32 %v1862_v25, %v176_v45  ;;  %v199_v54 = vsub.f32 %v1595_v6, %v1619_v14  ;;  %v205_v0 = vsub.f32 %v1625_v16, %v1595_v6  ;;  %v2231_v55 = vsub.f32 %v1595_v6, %v1622_v15 }
  0x51   :  { %v174_v48 = vmul.f32 %v1355_v27, %v172_v50  ;;  %v553_v24 = vmul.f32 %v551_v33, %v2220_v30  ;;  %v762_v37 = vmul.f32 %v1470_v36, %v761_v5  ;;  %v234_v17 = vsub.f32 %v1636_v19, %v1595_v6 }
  0x52   :  { %v195_v2 = vmul.f32 %v1357_v59, %v193_v1  ;;  %v201_v14 = vmul.f32 %v199_v54, %v1862_v25  ;;  %v222_v11 = vmul.f32 %v1883_v22, %v205_v0  ;;  %v230_v15 = vmul.f32 %v2231_v55, %v1883_v22 }
  0x53   :  { %v483_v57 = vmul.f32 %v1931_v61, %v151_v43  ;;  %v763_v21 = vadd.f32 %v1470_v36, %v762_v37  ;;  %vm769_vm9 = vcmp.eq.f32.partialorder %v768_v3, 8.507059e+37  ;;  %v251_v27 = vmul.f32 %v1902_v56, %v234_v17 }
  0x54   :  { %v197_v23 = vadd.f32 %v195_v2, %v174_v48  ;;  %v203_v32 = vmul.f32 %v1357_v59, %v201_v14  ;;  %v224_v62 = vmul.f32 %v1359_v10, %v222_v11  ;;  %v232_v49 = vmul.f32 %v1359_v10, %v230_v15 }
  0x55   :  { %v502_v45 = vmul.f32 %v1959_v53, %v205_v0  ;;  %v2251_v38 = vadd.f32 %v553_v24, %v2138_v40  ;;  %v767_v25 = vsel %vm2239_vm3, %v1470_v36, %v763_v21  ;;  %v253_v46 = vmul.f32 %v1361_v13, %v251_v27 }
  0x56   :  { %v508_v22 = vmul.f32 %v1959_v53, %v199_v54  ;;  %v2256_v61 = vsel %vm769_vm9, %v771_v42, %v767_v25  ;;  %v226_v3 = vadd.f32 %v224_v62, %v203_v32  ;;  %v485_v47 = vmul.f32 %v483_v57, %v197_v23  ;;  %v1417_v23 = vld [vmem:[%s3182_s3 + $0xd8] sm:$0xff] }
  0x57   :  { %v527_v50 = vmul.f32 %v2028_v44, %v234_v17  ;;  %v773_v59 = vmul.f32 %v2256_v61, %v2002_v60  ;;  %v255_v10 = vadd.f32 %v253_v46, %v232_v49  ;;  %v730_v33 = vmul.f32 %v2040_v8, %v151_v43  ;;  %1284 = vmatpush.msra.mxu0 %v1417_v23  ;;  %v1416_v23 = vld [vmem:[%s3182_s3 + $0xd0] sm:$0xff] }
  0x58   :  { %vm74_vm8 = vcmp.ge.f32.partialorder %v1595_v6, %v1636_v19  ;;  %v504_v40 = vmul.f32 %v502_v45, %v226_v3  ;;  %v510_v36 = vmul.f32 %v508_v22, %v226_v3  ;;  %vm77_vm10 = vcmp.lt.f32.partialorder %v1595_v6, %v1962_v63 }
  0x59   :  { %v2268_v53 = vsub.f32 %v1595_v6, %v1625_v16  ;;  %v775_v42 = vmul.f32 %v773_v59, %v2251_v38  ;;  %v529_v5 = vmul.f32 %v527_v50, %v255_v10  ;;  %v749_v60 = vmul.f32 %v2107_v9, %v234_v17  ;;  %vm79_vm11 = vmand %vm74_vm8, %vm77_vm10  ;;  %1285 = vmatpush.msra.mxu0 %v1416_v23  ;;  %v2493_v23 = vld [vmem:[%s3179_s0] sm:$0xff] }
  0x5a   :  { %v263_v8 = vsub.f32 %v1962_v63, %v1595_v6  ;;  %v506_v43 = vadd.f32 %v504_v40, %v485_v47  ;;  %v2275_v1 = vsel %vm79_vm11, 1.0, %v1535_v35  ;;  %v533_v37 = vmul.f32 %v2028_v44, %v2231_v55 }
  0x5b   :  { %v259_v48 = vmul.f32 %v2268_v53, %v1902_v56  ;;  %v777_v0 = vadd.f32 %v775_v42, %v2155_v29  ;;  %v531_v16 = vadd.f32 %v529_v5, %v510_v36  ;;  %v755_v11 = vmul.f32 %v2107_v9, %v199_v54  ;;  %v1396_v9 = vld [vmem:[%s3182_s3 + $0x60] sm:$0xff]  ;;  %v1409_v54 = vld [vmem:[%s3182_s3 + $0xa8] sm:$0xff] }
  0x5c   :  { %v280_v24 = vmul.f32 %v2180_v4, %v263_v8  ;;  %v732_v2 = vmul.f32 %v730_v33, %v506_v43  ;;  %v552_v14 = vmul.f32 %v2214_v52, %v263_v8  ;;  %vm84_vm12 = vcmp.ge.f32.partialorder %v1633_v18, %v1962_v63  ;;  %1179 = vmatpush.msrb.mxu1 %v1396_v9 }
  0x5d   :  { %v261_v17 = vmul.f32 %v1361_v13, %v259_v48  ;;  %1388 = vmatmul.msk.f32.vlgmr.msrb.gmra.mxu3 %vm981_vm0, %v777_v0  ;;  %v751_v6 = vmul.f32 %v749_v60, %v531_v16  ;;  %v2290_v56 = vperm.slane %v1613_v12, 6  ;;  %v2294_v44 = vsub.f32 %v1633_v18, %v1636_v19 }
  0x5e   :  { %v282_v39 = vmul.f32 %v2275_v1, %v280_v24  ;;  %v2297_v29 = vperm.slane %v1677_v26, 6  ;;  %v535_v57 = vmul.f32 %v533_v37, %v255_v10  ;;  %v2302_v21 = vperm.slane %v1777_v58, 6  ;;  %1250 = vmatpush.msra.mxu3 %v1409_v54  ;;  %v1408_v54 = vld [vmem:[%s3182_s3 + $0xa0] sm:$0xff] }
  0x5f   :  { %v753_v13 = vadd.f32 %v751_v6, %v732_v2  ;;  %vm87_vm13 = vcmp.lt.f32.partialorder %v1633_v18, %v2290_v56  ;;  %v287_v27 = vmul.f32 %v2294_v44, %v2180_v4  ;;  %v557_v32 = vmul.f32 %v2214_v52, %v1976_v41 }
  0x60   :  { %v2299_v15 = vadd.f32 %v282_v39, %v261_v17  ;;  %1471 = vrcp.f32 %v2297_v29  ;;  %v774_v49 = vmul.f32 %v2256_v61, %v263_v8  ;;  %vm89_vm14 = vmand %vm84_vm12, %vm87_vm13  ;;  %v303_v45 = vand.u32 2147483647, %v2297_v29  ;;  %1251 = vmatpush.msra.mxu3 %v1408_v54 }
  0x61   :  { %1383 = vmatmul.msk.f32.gmra.mxu2 %vm981_vm0, %v753_v13  ;;  %v305_v25 = vand.u32 2147483648, %v2297_v29  ;;  %1473 = vrcp.f32 %v2302_v21  ;;  %v779_v46 = vmul.f32 %v2256_v61, %v1756_v51  ;;  %v757_v3 = vmul.f32 %v755_v11, %v531_v16 }
  0x62   :  { %v554_v62 = vmul.f32 %v552_v14, %v2299_v15  ;;  %v2335_v47 = vsub.f32 %v2290_v56, %v1633_v18  ;;  %vm299_vm2 = vweird.f32 %v2297_v29  ;;  %v2339_v50 = vsel %vm89_vm14, 1.0, %v1535_v35  ;;  %v1423_v14 = vld [vmem:[%s3182_s3 + $0xf8] sm:$0xff] }
  0x63   :  { %v2342_v59 = vmul.f32 %v2034_v31, %v287_v27  ;;  %v2345_v10 = vmul.f32 %v557_v32, %v2220_v30  ;;  %v2348_v51 = vperm.slane %v1796_v7, 6  ;;  %vm2351_vm5 = vcmp.eq.f32.partialorder %v303_v45, 8.507059e+37  ;;  %1320 = vmatpush.msra.mxu1 %v1423_v14 }
  0x64   :  { %v2331_v22 = vadd.f32 %v554_v62, %v535_v57  ;;  %v306_v36 = vor.u32 1.1754944e-38, %v305_v25  ;;  %v571_v42 = vand.u32 2147483647, %v2302_v21  ;;  %v2357_v5 = vperm.slane %v1613_v12, 7 }
  0x65   :  { %vm567_vm15 = vweird.f32 %v2302_v21  ;;  %v573_v30 = vand.u32 2147483648, %v2302_v21  ;;  %v2362_v60 = vmul.f32 %v779_v46, %v2251_v38  ;;  %1475 = vrcp.f32 %v2348_v51 }
  0x66   :  { %v776_v33 = vmul.f32 %v774_v49, %v2331_v22  ;;  %v1472_v31 = vpop.eup %1471  ;;  %v793_v48 = vand.u32 2147483647, %v2348_v51  ;;  %vm95_vm1 = vcmp.ge.f32.partialorder %v1633_v18, %v2290_v56  ;;  %v795_v16 = vand.u32 2147483648, %v2348_v51 }
  0x67   :  { %v295_v43 = vmul.f32 %v1472_v31, %v2297_v29  ;;  %v1474_v0 = vpop.eup %1473  ;;  %vm98_vm4 = vcmp.lt.f32.partialorder %v1633_v18, %v2357_v5  ;;  %v2374_v38 = vsub.f32 %v1633_v18, %v1962_v63  ;;  %v2377_v24 = vperm.slane %v1677_v26, 7  ;;  %v1402_v26 = vld [vmem:[%s3182_s3 + $0x80] sm:$0xff] }
  0x68   :  { %v778_v8 = vadd.f32 %v776_v33, %v757_v3  ;;  %vm300_vm6 = vweird.f32 %v1472_v31  ;;  %v563_v2 = vmul.f32 %v1474_v0, %v2302_v21  ;;  %vm2381_vm7 = vcmp.eq.f32.partialorder %v571_v42, 8.507059e+37  ;;  %vm2407_vm10 = vmand %vm95_vm1, %vm98_vm4  ;;  %1215 = vmatpush.msra.mxu2 %v1402_v26 }
  0x69   :  { %v296_v37 = vsub.f32 1.0, %v295_v43  ;;  %v574_v6 = vor.u32 1.1754944e-38, %v573_v30  ;;  %vm789_vm3 = vweird.f32 %v2348_v51  ;;  %v2388_v39 = vsub.f32 %v2357_v5, %v1633_v18  ;;  %vm2420_vm11 = vmor %vm299_vm2, %vm300_vm6 }
  0x6a   :  { %1389 = vmatmul.msk.f32.gmra.mxu3 %vm981_vm0, %v778_v8  ;;  %1477 = vrcp.f32 %v2377_v24  ;;  %v564_v13 = vsub.f32 1.0, %v563_v2  ;;  %vm568_vm9 = vweird.f32 %v1474_v0  ;;  %vm2397_vm8 = vcmp.eq.f32.partialorder %v793_v48, 8.507059e+37 }
  0x6b   :  { %v297_v11 = vmul.f32 %v1472_v31, %v296_v37  ;;  %v1476_v27 = vpop.eup %1475  ;;  %v796_v62 = vor.u32 1.1754944e-38, %v795_v16  ;;  %v332_v49 = vand.u32 2147483647, %v2377_v24  ;;  %v2426_v45 = vperm.slane %v1777_v58, 7  ;;  %vm2436_vm12 = vmor %vm567_vm15, %vm568_vm9 }
  0x6c   :  { %v2429_v25 = vperm.slane %v1796_v7, 7  ;;  %v565_v3 = vmul.f32 %v1474_v0, %v564_v13  ;;  %v785_v33 = vmul.f32 %v1476_v27, %v2348_v51  ;;  %v334_v29 = vand.u32 2147483648, %v2377_v24 }
  0x6d   :  { %v298_v46 = vadd.f32 %v1472_v31, %v297_v11  ;;  %v2443_v58 = vsel %vm2407_vm10, 1.0, %v1535_v35  ;;  %vm328_vm13 = vweird.f32 %v2377_v24  ;;  %v2448_v7 = vsub.f32 %v1633_v18, %v2290_v56 }
  0x6e   :  { %1479 = vrcp.f32 %v2426_v45  ;;  %v566_v30 = vadd.f32 %v1474_v0, %v565_v3  ;;  %v786_v8 = vsub.f32 1.0, %v785_v33  ;;  %vm790_vm14 = vweird.f32 %v1476_v27 }
  0x6f   :  { %v302_v21 = vsel %vm2420_vm11, %v1472_v31, %v298_v46  ;;  %vm2457_vm2 = vcmp.eq.f32.partialorder %v332_v49, 8.507059e+37  ;;  %v596_v18 = vand.u32 2147483647, %v2426_v45  ;;  %1481 = vrcp.f32 %v2429_v25 }
  0x70   :  { %v1478_v43 = vpop.eup %1477  ;;  %v2455_v48 = vsel %vm2351_vm5, %v306_v36, %v302_v21  ;;  %v570_v31 = vsel %vm2436_vm12, %v1474_v0, %v566_v30  ;;  %v787_v2 = vmul.f32 %v1476_v27, %v786_v8  ;;  %v335_v26 = vor.u32 1.1754944e-38, %v334_v29  ;;  %vm2473_vm5 = vmor %vm789_vm3, %vm790_vm14 }
  0x71   :  { %v308_v37 = vmul.f32 %v2455_v48, %v2335_v47  ;;  %v2469_v40 = vsel %vm2381_vm7, %v574_v6, %v570_v31  ;;  %v316_v14 = vmul.f32 %v2374_v38, %v2455_v48  ;;  %v324_v11 = vmul.f32 %v1478_v43, %v2377_v24 }
  0x72   :  { %vm592_vm15 = vweird.f32 %v2426_v45  ;;  %v576_v17 = vmul.f32 %v2469_v40, %v2335_v47  ;;  %v788_v6 = vadd.f32 %v1476_v27, %v787_v2  ;;  %v598_v13 = vand.u32 2147483648, %v2426_v45 }
  0x73   :  { %v310_v0 = vmul.f32 %v2339_v50, %v308_v37  ;;  %v325_v9 = vsub.f32 1.0, %v324_v11  ;;  %vm329_vm1 = vweird.f32 %v1478_v43  ;;  %vm2485_vm4 = vcmp.eq.f32.partialorder %v596_v18, 8.507059e+37 }
  0x74   :  { %v1480_v51 = vpop.eup %1479  ;;  %vm814_vm6 = vweird.f32 %v2429_v25  ;;  %vm106_vm7 = vcmp.ge.f32.partialorder %v2493_v23, %v2357_v5  ;;  %v792_v49 = vsel %vm2473_vm5, %v1476_v27, %v788_v6  ;;  %v818_v3 = vand.u32 2147483647, %v2429_v25  ;;  %vm2514_vm3 = vmor %vm328_vm13, %vm329_vm1 }
  0x75   :  { %v312_v32 = vadd.f32 %v310_v0, %v2342_v59  ;;  %v588_v46 = vmul.f32 %v1480_v51, %v2426_v45  ;;  %v1482_v33 = vpop.eup %1481  ;;  %v2504_v29 = vsel %vm2397_vm8, %v796_v62, %v792_v49  ;;  %v318_v42 = vmul.f32 %v2339_v50, %v316_v14  ;;  %v2521_v50 = vld [vmem:[%s3180_s1 + $0x8] sm:$0xf] }
  0x76   :  { %v326_v21 = vmul.f32 %v1478_v43, %v325_v9  ;;  %v582_v30 = vmul.f32 %v2469_v40, %v2294_v44  ;;  %v798_v59 = vmul.f32 %v2504_v29, %v2335_v47  ;;  %vm593_vm9 = vweird.f32 %v1480_v51 }
  0x77   :  { %v578_v8 = vmul.f32 %v576_v17, %v312_v32  ;;  %v589_v57 = vsub.f32 1.0, %v588_v46  ;;  %v599_v18 = vor.u32 1.1754944e-38, %v598_v13  ;;  %v810_v37 = vmul.f32 %v1482_v33, %v2429_v25  ;;  %vm2537_vm10 = vmor %vm592_vm15, %vm593_vm9 }
  0x78   :  { %v327_v62 = vadd.f32 %v1478_v43, %v326_v21  ;;  %v820_v47 = vand.u32 2147483648, %v2429_v25  ;;  %vm2526_vm8 = vcmp.eq.f32.partialorder %v818_v3, 8.507059e+37  ;;  %v2531_v36 = vperm.slane %v2521_v50, 0  ;;  %v1422_v21 = vld [vmem:[%s3182_s3 + $0xf0] sm:$0xff] }
  0x79   :  { %v580_v31 = vadd.f32 %v578_v8, %v2345_v10  ;;  %v590_v24 = vmul.f32 %v1480_v51, %v589_v57  ;;  %v811_v0 = vsub.f32 1.0, %v810_v37  ;;  %vm815_vm11 = vweird.f32 %v1482_v33  ;;  %1321 = vmatpush.msra.mxu1 %v1422_v21 }
  0x7a   :  { %v331_v14 = vsel %vm2514_vm3, %v1478_v43, %v327_v62  ;;  %v351_v10 = vsub.f32 %v2521_v50, %v153_v20  ;;  %v804_v43 = vmul.f32 %v2504_v29, %v1976_v41  ;;  %v821_v49 = vor.u32 1.1754944e-38, %v820_v47  ;;  %vm2559_vm13 = vmor %vm814_vm6, %vm815_vm11 }
  0x7b   :  { %v800_v17 = vmul.f32 %v798_v59, %v580_v31  ;;  %v2546_v6 = vsel %vm2457_vm2, %v335_v26, %v331_v14  ;;  %v591_v13 = vadd.f32 %v1480_v51, %v590_v24  ;;  %v812_v9 = vmul.f32 %v1482_v33, %v811_v0 }
  0x7c   :  { %v337_v45 = vmul.f32 %v2546_v6, %v2388_v39  ;;  %vm109_vm12 = vcmp.lt.f32.partialorder %v2493_v23, %v2531_v36  ;;  %v352_v41 = vperm.slane %v351_v10, 0  ;;  %v2566_v26 = vsub.f32 %v2521_v50, %v464_v28 }
  0x7d   :  { %v802_v46 = vadd.f32 %v800_v17, %v2362_v60  ;;  %v595_v20 = vsel %vm2537_vm10, %v1480_v51, %v591_v13  ;;  %v345_v60 = vmul.f32 %v2448_v7, %v2546_v6  ;;  %v813_v25 = vadd.f32 %v1482_v33, %v812_v9  ;;  %vm111_vm14 = vmand %vm106_vm7, %vm109_vm12 }
  0x7e   :  { %v339_v3 = vmul.f32 %v2443_v58, %v337_v45  ;;  %v2573_v51 = vsel %vm2485_vm4, %v599_v18, %v595_v20  ;;  %v584_v8 = vmul.f32 %v582_v30, %v312_v32  ;;  %1483 = vrcp.f32 %v352_v41 }
  0x7f   :  { %1394 = vmatmul.msk.f32.vlgmr.msrb.gmra.mxu0 %vm981_vm0, %v802_v46  ;;  %v601_v28 = vmul.f32 %v2573_v51, %v2388_v39  ;;  %v607_v59 = vmul.f32 %v2573_v51, %v2374_v38  ;;  %v806_v27 = vmul.f32 %v804_v43, %v580_v31  ;;  %v817_v57 = vsel %vm2559_vm13, %v1482_v33, %v813_v25 }
  0x80   :  { %v341_v54 = vadd.f32 %v339_v3, %v318_v42  ;;  %v2590_v32 = vsel %vm2526_vm8, %v821_v49, %v817_v57  ;;  %v2594_v30 = vsub.f32 %v2531_v36, %v2493_v23  ;;  %v2597_v62 = vperm.slane %v2566_v26, 0 }
  0x81   :  { %v2602_v42 = vsub.f32 %v2521_v50, %v711_v34  ;;  %v2605_v18 = vmul.f32 %v2443_v58, %v345_v60  ;;  %v823_v37 = vmul.f32 %v2590_v32, %v2388_v39  ;;  %v2610_v47 = vsel %vm111_vm14, 1.0, %v1535_v35  ;;  %v2624_v39 = vld [vmem:[%s3179_s0 + $0x8] sm:$0xff] }
  0x82   :  { %v603_v33 = vmul.f32 %v601_v28, %v341_v54  ;;  %vm358_vm2 = vweird.f32 %v352_v41  ;;  %v362_v31 = vand.u32 2147483647, %v352_v41  ;;  %v364_v24 = vand.u32 2147483648, %v352_v41 }
  0x83   :  { %1485 = vrcp.f32 %v2597_v62  ;;  %v2615_v12 = vmul.f32 %v607_v59, %v341_v54  ;;  %v622_v34 = vand.u32 2147483647, %v2597_v62  ;;  %v2619_v58 = vperm.slane %v2602_v42, 0 }
  0x84   :  { %v2613_v2 = vadd.f32 %v603_v33, %v584_v8  ;;  %v1484_v14 = vpop.eup %1483  ;;  %vm85_vm5 = vcmp.ge.f32.partialorder %v2624_v39, %v1962_v63  ;;  %vm88_vm15 = vcmp.lt.f32.partialorder %v2624_v39, %v2290_v56  ;;  %v2632_v11 = vsub.f32 %v2624_v39, %v1636_v19 }
  0x85   :  { %v292_v0 = vsub.f32 %v2290_v56, %v2624_v39  ;;  %v2639_v17 = vmul.f32 %v2590_v32, %v2294_v44  ;;  %v354_v13 = vmul.f32 %v1484_v14, %v352_v41  ;;  %v624_v43 = vand.u32 2147483648, %v2597_v62  ;;  %vm90_vm1 = vmand %vm85_vm5, %vm88_vm15 }
  0x86   :  { %v825_v10 = vmul.f32 %v823_v37, %v2613_v2  ;;  %vm2642_vm4 = vcmp.eq.f32.partialorder %v362_v31, 8.507059e+37  ;;  %v365_v9 = vor.u32 1.1754944e-38, %v364_v24  ;;  %vm618_vm6 = vweird.f32 %v2597_v62 }
  0x87   :  { %1487 = vrcp.f32 %v2619_v58  ;;  %v355_v49 = vsub.f32 1.0, %v354_v13  ;;  %vm359_vm7 = vweird.f32 %v1484_v14  ;;  %vm2648_vm3 = vcmp.eq.f32.partialorder %v622_v34, 8.507059e+37 }
  0x88   :  { %v827_v19 = vadd.f32 %v825_v10, %v806_v27  ;;  %v2653_v20 = vsel %vm90_vm1, 1.0, %v1535_v35  ;;  %v288_v16 = vmul.f32 %v2632_v11, %v2180_v4  ;;  %v309_v3 = vmul.f32 %v2455_v48, %v292_v0  ;;  %vm2664_vm8 = vmor %vm358_vm2, %vm359_vm7 }
  0x89   :  { %v1486_v44 = vpop.eup %1485  ;;  %v558_v60 = vmul.f32 %v2214_v52, %v2268_v53  ;;  %v356_v25 = vmul.f32 %v1484_v14, %v355_v49  ;;  %v625_v8 = vor.u32 1.1754944e-38, %v624_v43  ;;  %vm840_vm9 = vweird.f32 %v2619_v58 }
  0x8a   :  { %1400 = vmatmul.msk.f32.vlgmr.msrb.gmra.mxu1 %vm981_vm0, %v827_v19  ;;  %v614_v21 = vmul.f32 %v1486_v44, %v2597_v62  ;;  %v844_v4 = vand.u32 2147483647, %v2619_v58  ;;  %v846_v54 = vand.u32 2147483648, %v2619_v58  ;;  %v290_v59 = vmul.f32 %v2275_v1, %v288_v16 }
  0x8b   :  { %v311_v52 = vmul.f32 %v2653_v20, %v309_v3  ;;  %v357_v27 = vadd.f32 %v1484_v14, %v356_v25  ;;  %vm619_vm10 = vweird.f32 %v1486_v44  ;;  %v577_v33 = vmul.f32 %v2469_v40, %v292_v0 }
  0x8c   :  { %v615_v57 = vsub.f32 1.0, %v614_v21  ;;  %v560_v41 = vmul.f32 %v558_v60, %v2299_v15  ;;  %v780_v24 = vmul.f32 %v2256_v61, %v2231_v55  ;;  %v2679_v34 = vperm.slane %v2521_v50, 1  ;;  %vm2691_vm11 = vmor %vm618_vm6, %vm619_vm10 }
  0x8d   :  { %v1488_v37 = vpop.eup %1487  ;;  %v2673_v31 = vadd.f32 %v311_v52, %v290_v59  ;;  %v361_v1 = vsel %vm2664_vm8, %v1484_v14, %v357_v27  ;;  %v799_v43 = vmul.f32 %v2504_v29, %v292_v0  ;;  %vm117_vm13 = vcmp.ge.f32.partialorder %v2493_v23, %v2531_v36 }
  0x8e   :  { %v616_v10 = vmul.f32 %v1486_v44, %v615_v57  ;;  %v836_v13 = vmul.f32 %v1488_v37, %v2619_v58  ;;  %v2687_v19 = vsel %vm2642_vm4, %v365_v9, %v361_v1  ;;  %vm841_vm12 = vweird.f32 %v1488_v37  ;;  %v1420_v1 = vld [vmem:[%s3182_s3 + $0xe0] sm:$0xff] }
  0x8f   :  { %v579_v55 = vmul.f32 %v577_v33, %v2673_v31  ;;  %v367_v61 = vmul.f32 %v2687_v19, %v2594_v30  ;;  %vm120_vm14 = vcmp.lt.f32.partialorder %v2493_v23, %v2679_v34  ;;  %v782_v62 = vmul.f32 %v780_v24, %v2331_v22  ;;  %vm2715_vm2 = vmor %vm840_vm9, %vm841_vm12 }
  0x90   :  { %v617_v14 = vadd.f32 %v1486_v44, %v616_v10  ;;  %v837_v0 = vsub.f32 1.0, %v836_v13  ;;  %v2707_v9 = vsub.f32 %v2493_v23, %v2357_v5  ;;  %v382_v49 = vrot.slane %v2521_v50, 7  ;;  %vm122_vm5 = vmand %vm117_vm13, %vm120_vm14 }
  0x91   :  { %v2702_v45 = vadd.f32 %v579_v55, %v560_v41  ;;  %v369_v16 = vmul.f32 %v2610_v47, %v367_v61  ;;  %v847_v21 = vor.u32 1.1754944e-38, %v846_v54  ;;  %v2731_v58 = vperm.slane %v2566_v26, 1  ;;  %v1421_v41 = vld [vmem:[%s3182_s3 + $0xe8] sm:$0xff] }
  0x92   :  { %v621_v3 = vsel %vm2691_vm11, %v1486_v44, %v617_v14  ;;  %v838_v60 = vmul.f32 %v1488_v37, %v837_v0  ;;  %v2728_v44 = vsub.f32 %v2521_v50, %v382_v49  ;;  %vm845_vm15 = vcmp.eq.f32.partialorder %v844_v4, 8.507059e+37  ;;  %v1415_v4 = vld [vmem:[%s3182_s3 + $0xc8] sm:$0xff]  ;;  %1322 = vmatpush.msra.mxu1 %v1421_v41 }
  0x93   :  { %v2721_v22 = vsel %vm2648_vm3, %v625_v8, %v621_v3  ;;  %v801_v28 = vmul.f32 %v799_v43, %v2702_v45  ;;  %v371_v59 = vadd.f32 %v369_v16, %v2605_v18  ;;  %v375_v52 = vmul.f32 %v2707_v9, %v2687_v19  ;;  %1286 = vmatpush.msra.mxu0 %v1415_v4 }
  0x94   :  { %v627_v54 = vmul.f32 %v2721_v22, %v2594_v30  ;;  %v839_v46 = vadd.f32 %v1488_v37, %v838_v60  ;;  %v2739_v27 = vperm.slane %v2728_v44, 1  ;;  %1489 = vrcp.f32 %v2731_v58  ;;  %1323 = vmatpush.msra.mxu1 %v1420_v1 }
  0x95   :  { %v803_v8 = vadd.f32 %v801_v28, %v782_v62  ;;  %v831_v26 = vmul.f32 %v2639_v17, %v2613_v2  ;;  %v2747_v33 = vsel %vm122_vm5, 1.0, %v1535_v35  ;;  %v633_v2 = vmul.f32 %v2721_v22, %v2448_v7 }
  0x96   :  { %v629_v57 = vmul.f32 %v627_v54, %v371_v59  ;;  %v843_v18 = vsel %vm2715_vm2, %v1488_v37, %v839_v46  ;;  %1491 = vrcp.f32 %v2739_v27  ;;  %v647_v17 = vand.u32 2147483647, %v2731_v58  ;;  %v1414_v37 = vld [vmem:[%s3182_s3 + $0xc0] sm:$0xff] }
  0x97   :  { %v2755_v24 = vsel %vm845_vm15, %v847_v21, %v843_v18  ;;  %1395 = vmatmul.msk.f32.gmra.mxu0 %vm981_vm0, %v803_v8  ;;  %v2775_v43 = vsub.f32 %v2679_v34, %v2493_v23  ;;  %v395_v15 = vand.u32 2147483647, %v2739_v27  ;;  %v2779_v55 = vmul.f32 %v2610_v47, %v375_v52 }
  0x98   :  { %v2769_v10 = vadd.f32 %v629_v57, %v2615_v12  ;;  %v849_v13 = vmul.f32 %v2755_v24, %v2594_v30  ;;  %v397_v61 = vand.u32 2147483648, %v2739_v27  ;;  %vm643_vm1 = vweird.f32 %v2731_v58  ;;  %1287 = vmatpush.msra.mxu0 %v1414_v37 }
  0x99   :  { %v649_v12 = vand.u32 2147483648, %v2731_v58  ;;  %vm391_vm4 = vweird.f32 %v2739_v27  ;;  %v2787_v30 = vperm.slane %v2602_v42, 1  ;;  %vm96_vm6 = vcmp.ge.f32.partialorder %v2624_v39, %v2290_v56 }
  0x9a   :  { %v851_v14 = vmul.f32 %v849_v13, %v2769_v10  ;;  %v1490_v47 = vpop.eup %1489  ;;  %v2791_v0 = vmul.f32 %v633_v2, %v371_v59  ;;  %vm2793_vm7 = vcmp.eq.f32.partialorder %v647_v17, 8.507059e+37  ;;  %vm99_vm3 = vcmp.lt.f32.partialorder %v2624_v39, %v2357_v5 }
  0x9b   :  { %v2801_v49 = vsub.f32 %v2624_v39, %v1962_v63  ;;  %vm2803_vm9 = vcmp.eq.f32.partialorder %v395_v15, 8.507059e+37  ;;  %v639_v60 = vmul.f32 %v1490_v47, %v2731_v58  ;;  %v2810_v25 = vmul.f32 %v2755_v24, %v2374_v38  ;;  %vm101_vm8 = vmand %vm96_vm6, %vm99_vm3 }
  0x9c   :  { %v853_v16 = vadd.f32 %v851_v14, %v831_v26  ;;  %1493 = vrcp.f32 %v2787_v30  ;;  %v1492_v21 = vpop.eup %1491  ;;  %v398_v28 = vor.u32 1.1754944e-38, %v397_v61  ;;  %v650_v59 = vor.u32 1.1754944e-38, %v649_v12 }
  0x9d   :  { %v869_v63 = vand.u32 2147483647, %v2787_v30  ;;  %v871_v54 = vand.u32 2147483648, %v2787_v30  ;;  %v387_v46 = vmul.f32 %v1492_v21, %v2739_v27  ;;  %v640_v8 = vsub.f32 1.0, %v639_v60 }
  0x9e   :  { %1406 = vmatmul.msk.f32.vlgmr.msra.gmra.mxu2 %vm981_vm0, %v853_v16  ;;  %vm644_vm10 = vweird.f32 %v1490_v47  ;;  %v317_v38 = vmul.f32 %v2801_v49, %v2455_v48  ;;  %vm865_vm11 = vweird.f32 %v2787_v30  ;;  %v1367_v52 = vsel %vm101_vm8, 1.0, %v1535_v35 }
  0x9f   :  { %v321_v26 = vsub.f32 %v2357_v5, %v2624_v39  ;;  %v583_v57 = vmul.f32 %v2469_v40, %v2632_v11  ;;  %v388_v18 = vsub.f32 1.0, %v387_v46  ;;  %vm392_vm12 = vweird.f32 %v1492_v21  ;;  %vm2827_vm13 = vmor %vm643_vm1, %vm644_vm10 }
  0xa0   :  { %v641_v4 = vmul.f32 %v1490_v47, %v640_v8  ;;  %v872_v41 = vor.u32 1.1754944e-38, %v871_v54  ;;  %vm2831_vm14 = vcmp.eq.f32.partialorder %v869_v63, 8.507059e+37  ;;  %v319_v17 = vmul.f32 %v2653_v20, %v317_v38  ;;  %vm2845_vm5 = vmor %vm391_vm4, %vm392_vm12 }
  0xa1   :  { %v338_v37 = vmul.f32 %v2546_v6, %v321_v26  ;;  %v585_v40 = vmul.f32 %v583_v57, %v2673_v31  ;;  %v805_v1 = vmul.f32 %v2504_v29, %v2268_v53  ;;  %v389_v15 = vmul.f32 %v1492_v21, %v388_v18 }
  0xa2   :  { %v1494_v13 = vpop.eup %1493  ;;  %v642_v58 = vadd.f32 %v1490_v47, %v641_v4  ;;  %v602_v61 = vmul.f32 %v2573_v51, %v321_v26  ;;  %vm107_vm2 = vcmp.ge.f32.partialorder %v2624_v39, %v2357_v5  ;;  %v824_v14 = vmul.f32 %v2590_v32, %v321_v26 }
  0xa3   :  { %v861_v20 = vmul.f32 %v1494_v13, %v2787_v30  ;;  %v340_v31 = vmul.f32 %v1367_v52, %v338_v37  ;;  %vm110_vm15 = vcmp.lt.f32.partialorder %v2624_v39, %v2531_v36  ;;  %v390_v53 = vadd.f32 %v1492_v21, %v389_v15 }
  0xa4   :  { %v646_v29 = vsel %vm2827_vm13, %v1490_v47, %v642_v58  ;;  %v2857_v16 = vsub.f32 %v2624_v39, %v2290_v56  ;;  %v350_v27 = vsub.f32 %v2531_v36, %v2624_v39  ;;  %vm866_vm1 = vweird.f32 %v1494_v13  ;;  %vm112_vm4 = vmand %vm107_vm2, %vm110_vm15 }
  0xa5   :  { %v2863_v60 = vsel %vm2793_vm7, %v650_v59, %v646_v29  ;;  %v862_v63 = vsub.f32 1.0, %v861_v20  ;;  %v342_v54 = vadd.f32 %v340_v31, %v319_v17  ;;  %v394_v46 = vsel %vm2845_vm5, %v1492_v21, %v390_v53  ;;  %vm2883_vm6 = vmor %vm865_vm11, %vm866_vm1 }
  0xa6   :  { %v1369_v47 = vsel %vm112_vm4, 1.0, %v1535_v35  ;;  %v346_v56 = vmul.f32 %v2857_v16, %v2546_v6  ;;  %v608_v8 = vmul.f32 %v2573_v51, %v2801_v49  ;;  %v2874_v62 = vsel %vm2803_vm9, %v398_v28, %v394_v46 }
  0xa7   :  { %v863_v59 = vmul.f32 %v1494_v13, %v862_v63  ;;  %v604_v38 = vmul.f32 %v602_v61, %v342_v54  ;;  %v368_v26 = vmul.f32 %v2687_v19, %v350_v27  ;;  %v400_v57 = vmul.f32 %v2874_v62, %v2775_v43 }
  0xa8   :  { %v652_v21 = vmul.f32 %v2863_v60, %v2775_v43  ;;  %v807_v51 = vmul.f32 %v805_v1, %v2702_v45  ;;  %v348_v3 = vmul.f32 %v1367_v52, %v346_v56  ;;  %v628_v2 = vmul.f32 %v2721_v22, %v350_v27 }
  0xa9   :  { %v864_v28 = vadd.f32 %v1494_v13, %v863_v59  ;;  %v606_v18 = vadd.f32 %v604_v38, %v585_v40  ;;  %v370_v4 = vmul.f32 %v1369_v47, %v368_v26  ;;  %v402_v17 = vmul.f32 %v2747_v33, %v400_v57 }
  0xaa   :  { %v610_v37 = vmul.f32 %v608_v8, %v342_v54  ;;  %vm118_vm7 = vcmp.ge.f32.partialorder %v2624_v39, %v2531_v36  ;;  %vm121_vm3 = vcmp.lt.f32.partialorder %v2624_v39, %v2679_v34  ;;  %v830_v52 = vmul.f32 %v2590_v32, %v2632_v11 }
  0xab   :  { %v868_v30 = vsel %vm2883_vm6, %v1494_v13, %v864_v28  ;;  %v826_v15 = vmul.f32 %v824_v14, %v606_v18  ;;  %v372_v45 = vadd.f32 %v370_v4, %v348_v3  ;;  %vm123_vm9 = vmand %vm118_vm7, %vm121_vm3  ;;  %v404_v40 = vadd.f32 %v402_v17, %v2779_v55 }
  0xac   :  { %v857_v1 = vmul.f32 %v2810_v25, %v2769_v10  ;;  %v2903_v58 = vsel %vm2831_vm14, %v872_v41, %v868_v30  ;;  %v2907_v61 = vsub.f32 %v2624_v39, %v2357_v5  ;;  %v850_v20 = vmul.f32 %v2755_v24, %v350_v27 }
  0xad   :  { %v828_v13 = vadd.f32 %v826_v15, %v807_v51  ;;  %v630_v12 = vmul.f32 %v628_v2, %v372_v45  ;;  %v380_v32 = vsub.f32 %v2679_v34, %v2624_v39  ;;  %v654_v11 = vmul.f32 %v652_v21, %v404_v40 }
  0xae   :  { %v874_v55 = vmul.f32 %v2903_v58, %v2775_v43  ;;  %v2915_v10 = vsel %vm123_vm9, 1.0, %v1535_v35  ;;  %v376_v25 = vmul.f32 %v2907_v61, %v2687_v19  ;;  %v832_v41 = vmul.f32 %v830_v52, %v606_v18 }
  0xaf   :  { %1401 = vmatmul.msk.f32.gmra.mxu1 %vm981_vm0, %v828_v13  ;;  %v632_v5 = vadd.f32 %v630_v12, %v610_v37  ;;  %v401_v48 = vmul.f32 %v2874_v62, %v380_v32  ;;  %v634_v31 = vmul.f32 %v2721_v22, %v2857_v16  ;;  %v656_v14 = vadd.f32 %v654_v11, %v2791_v0 }
  0xb0   :  { %v378_v53 = vmul.f32 %v1369_v47, %v376_v25  ;;  %v653_v43 = vmul.f32 %v2863_v60, %v380_v32  ;;  %v856_v29 = vmul.f32 %v2755_v24, %v2801_v49  ;;  %vm128_vm8 = vcmp.ge.f32.partialorder %v2493_v23, %v2679_v34 }
  0xb1   :  { %v852_v27 = vmul.f32 %v850_v20, %v632_v5  ;;  %v403_v19 = vmul.f32 %v2915_v10, %v401_v48  ;;  %v2931_v63 = vperm.slane %v2521_v50, 2  ;;  %v876_v54 = vmul.f32 %v874_v55, %v656_v14 }
  0xb2   :  { %v2935_v22 = vsub.f32 %v2493_v23, %v2531_v36  ;;  %v414_v0 = vperm.slane %v2728_v44, 2  ;;  %v636_v24 = vmul.f32 %v634_v31, %v372_v45  ;;  %v858_v8 = vmul.f32 %v856_v29, %v632_v5 }
  0xb3   :  { %v854_v46 = vadd.f32 %v852_v27, %v832_v41  ;;  %v2938_v47 = vadd.f32 %v403_v19, %v378_v53  ;;  %vm131_vm10 = vcmp.lt.f32.partialorder %v2493_v23, %v2931_v63  ;;  %v878_v49 = vadd.f32 %v876_v54, %v857_v1 }
  0xb4   :  { %vm133_vm11 = vmand %vm128_vm8, %vm131_vm10  ;;  %1495 = vrcp.f32 %v414_v0  ;;  %v875_v59 = vmul.f32 %v2903_v58, %v380_v32  ;;  %v408_v38 = vmul.f32 %v2935_v22, %v2874_v62  ;;  %v2950_v26 = vsub.f32 %v2931_v63, %v2493_v23 }
  0xb5   :  { %1407 = vmatmul.msk.f32.gmra.mxu2 %vm981_vm0, %v854_v46  ;;  %v655_v56 = vmul.f32 %v653_v43, %v2938_v47  ;;  %1412 = vmatmul.msk.f32.vlgmr.msra.gmra.mxu3 %vm981_vm0, %v878_v49  ;;  %v424_v57 = vand.u32 2147483647, %v414_v0  ;;  %v658_v21 = vmul.f32 %v2863_v60, %v2707_v9  ;;  %v662_v6 = vrot.slane %v2521_v50, 6 }
  0xb6   :  { %v2958_v3 = vsel %vm133_vm11, 1.0, %v1535_v35  ;;  %vm420_vm12 = vweird.f32 %v414_v0  ;;  %v2961_v28 = vperm.slane %v2602_v42, 2  ;;  %v426_v18 = vand.u32 2147483648, %v414_v0 }
  0xb7   :  { %v2955_v51 = vadd.f32 %v655_v56, %v636_v24  ;;  %v664_v4 = vsub.f32 %v2521_v50, %v662_v6  ;;  %v880_v2 = vmul.f32 %v2903_v58, %v2448_v7  ;;  %v2967_v17 = vperm.slane %v2521_v50, 3 }
  0xb8   :  { %v2971_v30 = vmul.f32 %v2747_v33, %v408_v38  ;;  %1497 = vrcp.f32 %v2961_v28  ;;  %vm139_vm13 = vcmp.ge.f32.partialorder %v2493_v23, %v2931_v63  ;;  %vm2976_vm14 = vcmp.eq.f32.partialorder %v424_v57, 8.507059e+37 }
  0xb9   :  { %v877_v37 = vmul.f32 %v875_v59, %v2955_v51  ;;  %v2980_v45 = vmul.f32 %v658_v21, %v404_v40  ;;  %v2982_v7 = vperm.slane %v664_v4, 2  ;;  %vm142_vm2 = vcmp.lt.f32.partialorder %v2493_v23, %v2967_v17 }
  0xba   :  { %v1496_v42 = vpop.eup %1495  ;;  %v894_v1 = vand.u32 2147483647, %v2961_v28  ;;  %v896_v13 = vand.u32 2147483648, %v2961_v28  ;;  %v427_v12 = vor.u32 1.1754944e-38, %v426_v18  ;;  %v2990_v32 = vmul.f32 %v880_v2, %v656_v14  ;;  %vm144_vm5 = vmand %vm139_vm13, %vm142_vm2 }
  0xbb   :  { %v879_v52 = vadd.f32 %v877_v37, %v858_v8  ;;  %v416_v33 = vmul.f32 %v1496_v42, %v414_v0  ;;  %1499 = vrcp.f32 %v2982_v7  ;;  %v677_v20 = vand.u32 2147483648, %v2982_v7 }
  0xbc   :  { %vm421_vm15 = vweird.f32 %v1496_v42  ;;  %v675_v11 = vand.u32 2147483647, %v2982_v7  ;;  %vm890_vm1 = vweird.f32 %v2961_v28  ;;  %vm671_vm4 = vweird.f32 %v2982_v7 }
  0xbd   :  { %v417_v40 = vsub.f32 1.0, %v416_v33  ;;  %1413 = vmatmul.msk.f32.gmra.mxu3 %vm981_vm0, %v879_v52  ;;  %v435_v55 = vsub.f32 %v2493_v23, %v2679_v34  ;;  %v2999_v25 = vperm.slane %v2728_v44, 3  ;;  %v3001_v5 = vperm.slane %v664_v4, 3  ;;  %vm3015_vm7 = vmor %vm420_vm12, %vm421_vm15 }
  0xbe   :  { %v1498_v41 = vpop.eup %1497  ;;  %vm3003_vm6 = vcmp.eq.f32.partialorder %v894_v1, 8.507059e+37  ;;  %v897_v14 = vor.u32 1.1754944e-38, %v896_v13  ;;  %v3008_v53 = vsel %vm144_vm5, 1.0, %v1535_v35  ;;  %v3012_v43 = vsub.f32 %v2967_v17, %v2493_v23 }
  0xbf   :  { %v418_v48 = vmul.f32 %v1496_v42, %v417_v40  ;;  %v678_v29 = vor.u32 1.1754944e-38, %v677_v20  ;;  %v886_v27 = vmul.f32 %v1498_v41, %v2961_v28  ;;  %1501 = vrcp.f32 %v2999_v25 }
  0xc0   :  { %v909_v19 = vrot.slane %v2521_v50, 5  ;;  %vm3022_vm3 = vcmp.eq.f32.partialorder %v675_v11, 8.507059e+37  ;;  %v453_v23 = vand.u32 2147483647, %v2999_v25  ;;  %1503 = vrcp.f32 %v3001_v5 }
  0xc1   :  { %v419_v54 = vadd.f32 %v1496_v42, %v418_v48  ;;  %vm129_vm9 = vcmp.ge.f32.partialorder %v2624_v39, %v2679_v34  ;;  %v1500_v0 = vpop.eup %1499  ;;  %v887_v24 = vsub.f32 1.0, %v886_v27  ;;  %vm891_vm8 = vweird.f32 %v1498_v41 }
  0xc2   :  { %v455_v49 = vand.u32 2147483648, %v2999_v25  ;;  %v700_v56 = vand.u32 2147483647, %v3001_v5  ;;  %v667_v59 = vmul.f32 %v1500_v0, %v2982_v7  ;;  %vm449_vm10 = vweird.f32 %v2999_v25  ;;  %vm3048_vm2 = vmor %vm890_vm1, %vm891_vm8 }
  0xc3   :  { %v423_v8 = vsel %vm3015_vm7, %v1496_v42, %v419_v54  ;;  %vm132_vm11 = vcmp.lt.f32.partialorder %v2624_v39, %v2931_v63  ;;  %v888_v57 = vmul.f32 %v1498_v41, %v887_v24  ;;  %vm696_vm12 = vweird.f32 %v3001_v5 }
  0xc4   :  { %v3040_v38 = vsel %vm2976_vm14, %v427_v12, %v423_v8  ;;  %v702_v21 = vand.u32 2147483648, %v3001_v5  ;;  %v668_v18 = vsub.f32 1.0, %v667_v59  ;;  %vm672_vm13 = vweird.f32 %v1500_v0 }
  0xc5   :  { %v429_v6 = vmul.f32 %v3040_v38, %v2950_v26  ;;  %vm3052_vm5 = vcmp.eq.f32.partialorder %v453_v23, 8.507059e+37  ;;  %v1502_v37 = vpop.eup %1501  ;;  %v889_v42 = vadd.f32 %v1498_v41, %v888_v57  ;;  %v456_v15 = vor.u32 1.1754944e-38, %v455_v49  ;;  %vm3069_vm15 = vmor %vm671_vm4, %vm672_vm13 }
  0xc6   :  { %vm3056_vm14 = vcmp.eq.f32.partialorder %v700_v56, 8.507059e+37  ;;  %v911_v33 = vsub.f32 %v2521_v50, %v909_v19  ;;  %v1504_v1 = vpop.eup %1503  ;;  %v669_v13 = vmul.f32 %v1500_v0, %v668_v18  ;;  %v445_v12 = vmul.f32 %v1502_v37, %v2999_v25  ;;  %vm134_vm4 = vmand %vm129_vm9, %vm132_vm11 }
  0xc7   :  { %v431_v28 = vmul.f32 %v2958_v3, %v429_v6  ;;  %v3065_v20 = vsub.f32 %v2624_v39, %v2531_v36  ;;  %v893_v11 = vsel %vm3048_vm2, %v1498_v41, %v889_v42  ;;  %v437_v50 = vmul.f32 %v435_v55, %v3040_v38 }
  0xc8   :  { %v692_v48 = vmul.f32 %v1504_v1, %v3001_v5  ;;  %v703_v44 = vor.u32 1.1754944e-38, %v702_v21  ;;  %v670_v27 = vadd.f32 %v1500_v0, %v669_v13  ;;  %v446_v19 = vsub.f32 1.0, %v445_v12 }
  0xc9   :  { %vm450_vm1 = vweird.f32 %v1502_v37  ;;  %vm697_vm7 = vweird.f32 %v1504_v1  ;;  %v433_v36 = vadd.f32 %v431_v28, %v2971_v30  ;;  %v3086_v7 = vsel %vm3003_vm6, %v897_v14, %v893_v11 }
  0xca   :  { %v693_v55 = vsub.f32 1.0, %v692_v48  ;;  %v3088_v41 = vperm.slane %v911_v33, 3  ;;  %v674_v54 = vsel %vm3069_vm15, %v1500_v0, %v670_v27  ;;  %v447_v23 = vmul.f32 %v1502_v37, %v446_v19  ;;  %vm3100_vm6 = vmor %vm449_vm10, %vm450_vm1 }
  0xcb   :  { %v409_v24 = vmul.f32 %v3065_v20, %v2874_v62  ;;  %v413_v49 = vsub.f32 %v2931_v63, %v2624_v39  ;;  %v679_v30 = vsel %vm3022_vm3, %v678_v29, %v674_v54  ;;  %v1373_v0 = vsel %vm134_vm4, 1.0, %v1535_v35  ;;  %vm3113_vm3 = vmor %vm696_vm12, %vm697_vm7 }
  0xcc   :  { %v694_v14 = vmul.f32 %v1504_v1, %v693_v55  ;;  %1505 = vrcp.f32 %v3088_v41  ;;  %v680_v56 = vmul.f32 %v679_v30, %v2950_v26  ;;  %v899_v62 = vmul.f32 %v3086_v7, %v2950_v26 }
  0xcd   :  { %v439_v8 = vmul.f32 %v2958_v3, %v437_v50  ;;  %v448_v46 = vadd.f32 %v1502_v37, %v447_v23  ;;  %v905_v59 = vmul.f32 %v3086_v7, %v2707_v9  ;;  %v411_v57 = vmul.f32 %v2915_v10, %v409_v24 }
  0xce   :  { %v695_v29 = vadd.f32 %v1504_v1, %v694_v14  ;;  %v430_v21 = vmul.f32 %v3040_v38, %v413_v49  ;;  %v682_v6 = vmul.f32 %v680_v56, %v433_v36  ;;  %v686_v3 = vmul.f32 %v679_v30, %v2935_v22 }
  0xcf   :  { %v452_v26 = vsel %vm3100_vm6, %v1502_v37, %v448_v46  ;;  %vm918_vm9 = vweird.f32 %v3088_v41  ;;  %v922_v9 = vand.u32 2147483647, %v3088_v41  ;;  %v659_v22 = vmul.f32 %v2863_v60, %v2907_v61 }
  0xd0   :  { %v457_v5 = vsel %vm3052_vm5, %v456_v15, %v452_v26  ;;  %v699_v18 = vsel %vm3113_vm3, %v1504_v1, %v695_v29  ;;  %v432_v4 = vmul.f32 %v1373_v0, %v430_v21  ;;  %v684_v10 = vadd.f32 %v682_v6, %v2980_v45  ;;  %v1005_v26 = vpop.f32.mrf.mxu0 }
  0xd1   :  { %v458_v42 = vmul.f32 %v457_v5, %v3012_v43  ;;  %v704_v37 = vsel %vm3056_vm14, %v703_v44, %v699_v18  ;;  %v924_v15 = vand.u32 2147483648, %v3088_v41  ;;  %v681_v1 = vmul.f32 %v679_v30, %v413_v49 }
  0xd2   :  { %v1506_v33 = vpop.eup %1505  ;;  %v705_v2 = vmul.f32 %v704_v37, %v3012_v43  ;;  %v434_v28 = vadd.f32 %v432_v4, %v411_v57  ;;  %v901_v13 = vmul.f32 %v899_v62, %v684_v10  ;;  %v881_v40 = vmul.f32 %v2903_v58, %v2857_v16 }
  0xd3   :  { %v460_v12 = vmul.f32 %v3008_v53, %v458_v42  ;;  %v914_v45 = vmul.f32 %v1506_v33, %v3088_v41  ;;  %v688_v52 = vmul.f32 %v686_v3, %v433_v36  ;;  %vm919_vm8 = vweird.f32 %v1506_v33  ;;  %v1034_v3 = vpop.f32.mrf.mxu1 }
  0xd4   :  { %v661_v11 = vmul.f32 %v659_v22, %v2938_v47  ;;  %v683_v60 = vmul.f32 %v681_v1, %v434_v28  ;;  %v903_v50 = vadd.f32 %v901_v13, %v2990_v32  ;;  %v900_v27 = vmul.f32 %v3086_v7, %v413_v49  ;;  %vm3158_vm13 = vmor %vm918_vm9, %vm919_vm8 }
  0xd5   :  { %v462_v48 = vadd.f32 %v460_v12, %v439_v8  ;;  %v915_v44 = vsub.f32 1.0, %v914_v45  ;;  %vm140_vm10 = vcmp.ge.f32.partialorder %v2624_v39, %v2931_v63  ;;  %vm143_vm11 = vcmp.lt.f32.partialorder %v2624_v39, %v2967_v17 }
  0xd6   :  { %v685_v19 = vadd.f32 %v683_v60, %v661_v11  ;;  %v436_v16 = vsub.f32 %v2624_v39, %v2679_v34  ;;  %1418 = vmatmul.msk.f32.vlgmr.msra.gmra.mxu0 %vm981_vm0, %v903_v50  ;;  %v883_v32 = vmul.f32 %v881_v40, %v2955_v51  ;;  %vm145_vm12 = vmand %vm140_vm10, %vm143_vm11  ;;  %v442_v53 = vsub.f32 %v2967_v17, %v2624_v39 }
  0xd7   :  { %v707_v58 = vmul.f32 %v705_v2, %v462_v48  ;;  %v916_v47 = vmul.f32 %v1506_v33, %v915_v44  ;;  %v925_v36 = vor.u32 1.1754944e-38, %v924_v15  ;;  %v1375_v34 = vsel %vm145_vm12, 1.0, %v1535_v35 }
  0xd8   :  { %v902_v55 = vmul.f32 %v900_v27, %v685_v19  ;;  %v438_v54 = vmul.f32 %v436_v16, %v3040_v38  ;;  %vm923_vm2 = vcmp.eq.f32.partialorder %v922_v9, 8.507059e+37  ;;  %v459_v51 = vmul.f32 %v457_v5, %v442_v53 }
  0xd9   :  { %v917_v23 = vadd.f32 %v1506_v33, %v916_v47  ;;  %v687_v24 = vmul.f32 %v679_v30, %v3065_v20  ;;  %v709_v49 = vadd.f32 %v707_v58, %v688_v52  ;;  %v706_v14 = vmul.f32 %v704_v37, %v442_v53 }
  0xda   :  { %v440_v39 = vmul.f32 %v1373_v0, %v438_v54  ;;  %v904_v41 = vadd.f32 %v902_v55, %v883_v32  ;;  %v461_v31 = vmul.f32 %v1375_v34, %v459_v51  ;;  %v907_v62 = vmul.f32 %v905_v59, %v684_v10  ;;  %v1037_v59 = vpop.f32.mrf.mxu3 }
  0xdb   :  { %v921_v17 = vsel %vm3158_vm13, %v1506_v33, %v917_v23  ;;  %v689_v46 = vmul.f32 %v687_v24, %v434_v28  ;;  %v906_v20 = vmul.f32 %v3086_v7, %v2907_v61  ;;  %v1035_v18 = vadd.f32 %v1034_v3, %v1005_v26  ;;  %v1438_v61 = vld [vmem:[%s3184_s5] ss:$0 sm:$0xff]  ;;  %s1536_s5 = smov [#allocation2]  }
  0xdc   :  { %v926_v56 = vsel %vm923_vm2, %v925_v36, %v921_v17  ;;  %v463_v35 = vadd.f32 %v461_v31, %v440_v39  ;;  %s1340_s10 = sshll.u32 %s1536_s5, 4  ;;  %s1341_s10 = int_to_ptr.vmem [resolvable:$true] %s1340_s10 }
  0xdd   :  { %v927_v8 = vmul.f32 %v926_v56, %v3012_v43  ;;  %v928_v30 = vmul.f32 %v926_v56, %v442_v53  ;;  %v908_v57 = vmul.f32 %v906_v20, %v685_v19  ;;  %v1008_v43 = vpop.f32.mrf.mxu2  ;;  %v1044_v7 = vadd.f32 %v1438_v61, %v1035_v18 }
  0xde   :  { %1419 = vmatmul.msk.f32.gmra.mxu0 %vm981_vm0, %v904_v41  ;;  %v708_v25 = vmul.f32 %v706_v14, %v463_v35  ;;  %v1038_v37 = vadd.f32 %v1037_v59, %v1008_v43 }
  0xdf   :  { %v929_v38 = vmul.f32 %v927_v8, %v709_v49 }
  0xe0   :  { %v710_v29 = vadd.f32 %v708_v25, %v689_v46  ;;  %v1045_v15 = vadd.f32 %v1438_v61, %v1038_v37 }
  0xe1   :  { %v931_v0 = vadd.f32 %v929_v38, %v907_v62 }
  0xe2   :  { %v930_v21 = vmul.f32 %v928_v30, %v710_v29  ;;  %v1109_v9 = vpop.f32.mrf.mxu3 }
  0xe3   :  { %1424 = vmatmul.msk.f32.vlgmr.msra.gmra.mxu1 %vm981_vm0, %v931_v0 }
  0xe4   :  { %v932_v6 = vadd.f32 %v930_v21, %v908_v57 }
  0xe5   :  { %v1073_v5 = vpop.f32.mrf.mxu2 }
  0xe6   :  { %v1079_v42 = vadd.f32 %v1073_v5, %v1044_v7 }
  0xe8   :  { %v1115_v33 = vadd.f32 %v1109_v9, %v1079_v42 }
  0xeb   :  { %1425 = vmatmul.msk.f32.gmra.mxu1 %vm981_vm0, %v932_v6  ;;  %vm1333_vm0 = vcmask 130048  }
  0xed   :  { %v1076_v10 = vpop.f32.mrf.mxu2  ;;  %v1112_v22 = vpop.f32.mrf.mxu3 }
  0xee   :  { %v1080_v13 = vadd.f32 %v1076_v10, %v1045_v15 }
  0xf0   :  { %v1116_v40 = vadd.f32 %v1112_v22, %v1080_v13 }
  0xfc   :  { %v1145_v4 = vpop.f32.mrf.mxu0 }
  0xfd   :  { %v1151_v1 = vadd.f32 %v1145_v4, %v1115_v33 }
 0x107   :  { %v1181_v2 = vpop.f32.mrf.mxu1 }
 0x108   :  { %v1187_v45 = vadd.f32 %v1181_v2, %v1151_v1 }
 0x114   :  { %v1148_v28 = vpop.f32.mrf.mxu0 }
 0x115   :  { %v1152_v50 = vadd.f32 %v1148_v28, %v1116_v40 }
 0x121   :  { %v1217_v12 = vpop.f32.mrf.mxu2 }
 0x122   :  { %v1223_v11 = vadd.f32 %v1217_v12, %v1187_v45 }
 0x12c   :  { %v1184_v60 = vpop.f32.mrf.mxu1 }
 0x12d   :  { %v1188_v19 = vadd.f32 %v1184_v60, %v1152_v50 }
 0x138   :  { %v1253_v52 = vpop.f32.mrf.mxu3  ;;  %v1220_v27 = vpop.f32.mrf.mxu2 }
 0x139   :  { %v1259_v44 = vadd.f32 %v1253_v52, %v1223_v11  ;;  %v1224_v58 = vadd.f32 %v1220_v27, %v1188_v19 }
 0x140   :  { %v1256_v47 = vpop.f32.mrf.mxu3 }
 0x141   :  { %v1260_v63 = vadd.f32 %v1256_v47, %v1224_v58 }
 0x153   :  { %v1289_v48 = vpop.f32.mrf.mxu0 }
 0x154   :  { %v1295_v16 = vadd.f32 %v1289_v48, %v1259_v44 }
 0x15b   :  { %v1292_v36 = vpop.f32.mrf.mxu0 }
 0x15c   :  { %v1296_v55 = vadd.f32 %v1292_v36, %v1260_v63 }
 0x160   :  { %v1325_v32 = vpop.f32.mrf.mxu1 }
 0x161   :  { %v1331_v53 = vadd.f32 %v1325_v32, %v1295_v16 }
 0x163   :  { %1334 = vst.msk [vmem:[#allocation2] sm:$0xff] %vm1333_vm0, %v1331_v53 }
 0x168   :  { %v1328_v34 = vpop.f32.mrf.mxu1 }
 0x169   :  { %v1332_v54 = vadd.f32 %v1328_v34, %v1296_v55 }
 0x16b   :  { %1335 = vst.msk [vmem:[#allocation2 + $0x8] sm:$0xff] %vm1333_vm0, %v1332_v54 }
 0x16c   :  { %1348 = dma.vmem_to_hbm [thread:$0]  %s1341_s10, 256, %s1343_s13, [#allocation3], %s1537_s14, %s1537_s14, %s1538_s15  }
 0x16d   :  { %1533 = dma.done.wait [#allocation3], 256  }
 0x16e   :  { %1534 = vsyncadd [#allocation3], 4294967040 }
 0x16f   :  { %1353 = vsyncpa [#allocation3], 1 }

</bundles_post_ra>
